<compile_context>
chip_gen: v5e
topology: v5e:2x2
jax: 0.10.0
libtpu: 0.0.40
codegen_flags: <defaults>
</compile_context>

<pallas_src>
import functools

import jax
import jax.numpy as jnp
from jax.experimental import pallas as pl
from jax.experimental.pallas import tpu as pltpu


def _tsp_kernel(x_ref, out_ref, s1_ref, s2_ref, *, total_t):
    t = pl.program_id(1)

    @pl.when(t == 0)
    def _():
        s1_ref[...] = jnp.zeros_like(s1_ref)
        s2_ref[...] = jnp.zeros_like(s2_ref)

    x = x_ref[...].astype(jnp.float32)          # (Bb, C, Tt)
    s1_ref[...] += jnp.sum(x, axis=-1)          # running sum_t x
    s2_ref[...] += jnp.sum(x * x, axis=-1)      # running sum_t x^2

    @pl.when(t == pl.num_programs(1) - 1)
    def _():
        c = s1_ref.shape[1]
        mean = s1_ref[...] * (1.0 / total_t)
        # Unbiased variance (torch.var default, correction=1); clamp tiny
        # negative values caused by f32 cancellation.
        var = (s2_ref[...] - s1_ref[...] * mean) * (1.0 / (total_t - 1))
        var = jnp.maximum(var, 0.0)
        out_ref[:, :c] = mean.astype(out_ref.dtype)
        out_ref[:, c:] = var.astype(out_ref.dtype)


def _pick_block_b(batch):
    """Largest batch block keeping (8,128)-legal output tiles and, when
    possible, >=2 grid steps along batch (v7x megacore sharding)."""
    if batch % 8 != 0:
        return batch                    # block == full dim is always legal
    for bb in (64, 32, 16, 8):
        if batch % bb == 0 and batch // bb >= 2:
            return bb
    return 8


def _pick_block_t(total_t, row_bytes, vmem_budget=16 << 20):
    """Largest multiple-of-128 divisor of T whose double-buffered input block
    fits `vmem_budget`; falls back to a full-T block when T is not aligned."""
    if total_t % 128 != 0:
        return total_t                  # block == full dim is always legal
    for k in range(total_t // 128, 0, -1):
        tt = k * 128
        if total_t % tt == 0 and 2 * row_bytes * tt <= vmem_budget:
            return tt
    return 128


def temporal_statistics_pooling(x_nct, *, block_b=None, block_t=None):
    """x_nct: (B, C, T). Returns (B, 2*C) = [mean over T, unbiased var over T]."""
    B, C, T = x_nct.shape
    assert T >= 2, "unbiased variance needs at least two frames"
    itemsize = jnp.dtype(x_nct.dtype).itemsize

    bb = block_b if block_b is not None else _pick_block_b(B)
    assert B % bb == 0
    tt = block_t if block_t is not None else _pick_block_t(T, bb * C * itemsize)
    assert T % tt == 0

    grid = (B // bb, T // tt)           # reduction (time) axis last

    # Rough VMEM need: double-buffered input + output blocks + f32 scratch.
    vmem_bytes = (2 * bb * C * tt * itemsize
                  + 2 * bb * 2 * C * itemsize
                  + 2 * bb * C * 4
                  + (2 << 20))
    vmem_limit = int(min(max(vmem_bytes, 16 << 20), 64 << 20))

    kernel = functools.partial(_tsp_kernel, total_t=T)
    return pl.pallas_call(
        kernel,
        out_shape=jax.ShapeDtypeStruct((B, 2 * C), x_nct.dtype),
        grid_spec=pltpu.PrefetchScalarGridSpec(
            num_scalar_prefetch=0,
            grid=grid,
            in_specs=[pl.BlockSpec((bb, C, tt), lambda b, t: (b, 0, t))],
            out_specs=pl.BlockSpec((bb, 2 * C), lambda b, t: (b, 0)),
            scratch_shapes=[
                pltpu.VMEM((bb, C), jnp.float32),   # running sum x
                pltpu.VMEM((bb, C), jnp.float32),   # running sum x^2
            ],
        ),
        compiler_params=pltpu.CompilerParams(
            dimension_semantics=("parallel", "arbitrary"),
            vmem_limit_bytes=vmem_limit,
        ),
    )(x_nct)


def tsp_reference(x_nct):
    """Pure-JAX reference mirroring the PyTorch forward exactly."""
    mean = jnp.mean(x_nct, axis=2)
    var = jnp.var(x_nct, axis=2, ddof=1)   # unbiased, like torch.var default
    return jnp.concatenate([mean, var], axis=1)


if __name__ == "__main__":
    B, C, T = 16, 128, 256                 # batch, channels, frames
    key = jax.random.PRNGKey(0)
    x = jax.random.normal(key, (B, C, T), dtype=jnp.float32)

    # block_t=128 forces 2 reduction steps so the accumulator path is exercised.
    out = temporal_statistics_pooling(x, block_t=128)
    out = jax.block_until_ready(out)

    ref = tsp_reference(x)
    assert out.shape == (B, 2 * C)
    assert jnp.allclose(out, ref, atol=1e-4, rtol=1e-4), "mismatch vs reference"

    print("KERNEL_OK")
</pallas_src>

<mosaic_0001>
module attributes {stable_mosaic.version = 11 : i64} {
  func.func @_tsp_kernel(%arg0: i32, %arg1: i32, %arg2: memref<8x128x128xf32, #tpu.memory_space<vmem>>, %arg3: memref<8x256xf32, #tpu.memory_space<vmem>>, %arg4: memref<8x128xf32, #tpu.memory_space<vmem>>, %arg5: memref<8x128xf32, #tpu.memory_space<vmem>>) attributes {dimension_semantics = [#tpu.dimension_semantics<parallel>, #tpu.dimension_semantics<arbitrary>], iteration_bounds = array<i64: 2, 2>, scalar_prefetch = 0 : i64, scratch_operands = 2 : i64, tpu.core_type = #tpu.core_type<tc>, window_params = [{transform_indices = @transform_0, window_bounds = array<i64: 8, 128, 128>}, {transform_indices = @transform_1, window_bounds = array<i64: 8, 256>}]} {
    %c0_i32 = arith.constant 0 : i32
    %0 = arith.cmpi eq, %arg1, %c0_i32 : i32
    %1 = arith.extui %0 : i1 to i32
    %c0_i32_0 = arith.constant 0 : i32
    %2 = arith.cmpi ne, %1, %c0_i32_0 : i32
    scf.if %2 {
      %cst_13 = arith.constant 0.000000e+00 : f32
      %16 = vector.broadcast %cst_13 : f32 to vector<8x128xf32>
      %c0_14 = arith.constant 0 : index
      %c0_15 = arith.constant 0 : index
      %17 = vector.load %arg4[%c0_14, %c0_15] : memref<8x128xf32, #tpu.memory_space<vmem>>, vector<8x128xf32>
      tpu.vector_store %arg4[%c0_14, %c0_15], %16 {strides = array<i32>} : memref<8x128xf32, #tpu.memory_space<vmem>>, vector<8x128xf32>,
      %cst_16 = arith.constant 0.000000e+00 : f32
      %18 = vector.broadcast %cst_16 : f32 to vector<8x128xf32>
      %c0_17 = arith.constant 0 : index
      %c0_18 = arith.constant 0 : index
      %19 = vector.load %arg5[%c0_17, %c0_18] : memref<8x128xf32, #tpu.memory_space<vmem>>, vector<8x128xf32>
      tpu.vector_store %arg5[%c0_17, %c0_18], %18 {strides = array<i32>} : memref<8x128xf32, #tpu.memory_space<vmem>>, vector<8x128xf32>,
    } else {
    }
    %c0 = arith.constant 0 : index
    %c0_1 = arith.constant 0 : index
    %c0_2 = arith.constant 0 : index
    %3 = vector.load %arg2[%c0, %c0_1, %c0_2] : memref<8x128x128xf32, #tpu.memory_space<vmem>>, vector<8x128x128xf32>
    %c0_3 = arith.constant 0 : index
    %c0_4 = arith.constant 0 : index
    %4 = vector.load %arg4[%c0_3, %c0_4] : memref<8x128xf32, #tpu.memory_space<vmem>>, vector<8x128xf32>
    %cst = arith.constant dense<0.000000e+00> : vector<8x128xf32>
    %5 = vector.multi_reduction <add>, %3, %cst [2] : vector<8x128x128xf32> to vector<8x128xf32>
    %6 = arith.addf %4, %5 : vector<8x128xf32>
    %c0_5 = arith.constant 0 : index
    %c0_6 = arith.constant 0 : index
    %7 = vector.load %arg4[%c0_5, %c0_6] : memref<8x128xf32, #tpu.memory_space<vmem>>, vector<8x128xf32>
    tpu.vector_store %arg4[%c0_5, %c0_6], %6 {strides = array<i32>} : memref<8x128xf32, #tpu.memory_space<vmem>>, vector<8x128xf32>,
    %c0_7 = arith.constant 0 : index
    %c0_8 = arith.constant 0 : index
    %8 = vector.load %arg5[%c0_7, %c0_8] : memref<8x128xf32, #tpu.memory_space<vmem>>, vector<8x128xf32>
    %9 = arith.mulf %3, %3 : vector<8x128x128xf32>
    %cst_9 = arith.constant dense<0.000000e+00> : vector<8x128xf32>
    %10 = vector.multi_reduction <add>, %9, %cst_9 [2] : vector<8x128x128xf32> to vector<8x128xf32>
    %11 = arith.addf %8, %10 : vector<8x128xf32>
    %c0_10 = arith.constant 0 : index
    %c0_11 = arith.constant 0 : index
    %12 = vector.load %arg5[%c0_10, %c0_11] : memref<8x128xf32, #tpu.memory_space<vmem>>, vector<8x128xf32>
    tpu.vector_store %arg5[%c0_10, %c0_11], %11 {strides = array<i32>} : memref<8x128xf32, #tpu.memory_space<vmem>>, vector<8x128xf32>,
    %c1_i32 = arith.constant 1 : i32
    %13 = arith.cmpi eq, %arg1, %c1_i32 : i32
    %14 = arith.extui %13 : i1 to i32
    %c0_i32_12 = arith.constant 0 : i32
    %15 = arith.cmpi ne, %14, %c0_i32_12 : i32
    scf.if %15 {
      %c0_13 = arith.constant 0 : index
      %c0_14 = arith.constant 0 : index
      %16 = vector.load %arg4[%c0_13, %c0_14] : memref<8x128xf32, #tpu.memory_space<vmem>>, vector<8x128xf32>
      %cst_15 = arith.constant 3.906250e-03 : f32
      %17 = vector.broadcast %cst_15 : f32 to vector<8x128xf32>
      %18 = arith.mulf %16, %17 : vector<8x128xf32>
      %c0_16 = arith.constant 0 : index
      %c0_17 = arith.constant 0 : index
      %19 = vector.load %arg5[%c0_16, %c0_17] : memref<8x128xf32, #tpu.memory_space<vmem>>, vector<8x128xf32>
      %c0_18 = arith.constant 0 : index
      %c0_19 = arith.constant 0 : index
      %20 = vector.load %arg4[%c0_18, %c0_19] : memref<8x128xf32, #tpu.memory_space<vmem>>, vector<8x128xf32>
      %21 = arith.mulf %20, %18 : vector<8x128xf32>
      %22 = arith.subf %19, %21 : vector<8x128xf32>
      %cst_20 = arith.constant 0.00392156886 : f32
      %23 = vector.broadcast %cst_20 : f32 to vector<8x128xf32>
      %24 = arith.mulf %22, %23 : vector<8x128xf32>
      %cst_21 = arith.constant 0.000000e+00 : f32
      %25 = vector.broadcast %cst_21 : f32 to vector<8x128xf32>
      %26 = arith.maximumf %24, %25 : vector<8x128xf32>
      %c0_22 = arith.constant 0 : index
      %c0_23 = arith.constant 0 : index
      %27 = vector.load %arg3[%c0_22, %c0_23] : memref<8x256xf32, #tpu.memory_space<vmem>>, vector<8x128xf32>
      tpu.vector_store %arg3[%c0_22, %c0_23], %18 {strides = array<i32>} : memref<8x256xf32, #tpu.memory_space<vmem>>, vector<8x128xf32>,
      %c0_24 = arith.constant 0 : index
      %c128 = arith.constant 128 : index
      %28 = vector.load %arg3[%c0_24, %c128] : memref<8x256xf32, #tpu.memory_space<vmem>>, vector<8x128xf32>
      tpu.vector_store %arg3[%c0_24, %c128], %26 {strides = array<i32>} : memref<8x256xf32, #tpu.memory_space<vmem>>, vector<8x128xf32>,
    } else {
    }
    return
  }
  func.func @transform_0(%arg0: i32, %arg1: i32) -> (i32, i32, i32) {
    %c0_i32 = arith.constant 0 : i32
    %c0_i32_0 = arith.constant 0 : i32
    return %arg0, %c0_i32, %arg1 : i32, i32, i32
  }
  func.func @transform_1(%arg0: i32, %arg1: i32) -> (i32, i32) {
    %c0_i32 = arith.constant 0 : i32
    %c0_i32_0 = arith.constant 0 : i32
    return %arg0, %c0_i32 : i32, i32
  }
}

</mosaic_0001>

<bundles_post_ra>
// kernel: tpu_custom_call.1
= control target key start
LH: loop header
LB: loop body
LE: loop exit
PB: predicated region body
PF: predicated region fallthrough
CT: control target
= control target key end

     0   :  { %6 = vsyncpa [#allocation5], 0  ;;  %s3835_s0 = inlined_call_operand.hbm [shape: f32[16,128,256], index: 0, kind: input, shape index: {}]   ;;  %s3836_s1 = inlined_call_operand.hbm [shape: f32[16,256], index: 1, kind: output, shape index: {}]  }
   0x1   :  { %8 = vsyncpa [#allocation5 + $0x1], 0 }
   0x2   :  { %9 = vsyncpa [#allocation6], 0 }
   0x3   :  { %11 = vsyncpa [#allocation6 + $0x1], 0  ;;  %s2233_s6 = smov 0   ;;  %s2235_s7 = smov 0  }
   0x4   :  { %s2237_s8 = smov 0   ;;  %s2239_s9 = smov 0  }
   0x5   :  { %s2241_s10 = smov 0   ;;  %s2243_s11 = smov 0  }
   0x6   :  { %s2245_s12 = smov 0   ;;  %s2247_s13 = smov 0  }
   0x7   :  { %s2249_s14 = smov 0   ;;  %s2251_s15 = smov 0  }
   0x8   :  { %s2253_s16 = smov 0  }
   0x9 LB: > { %3860 = sst [smem:[#allocation10_spill]] %s2197_s11  ;;  %s1854_s17 = sadd.s32 4294967295, %s2217_s16   ;;  %s2217_s16 = sphi %s2253_s16, %s17_s16   ;;  %s2213_s15 = sphi %s2251_s15, %s4107_s15   ;;  %s2209_s14 = sphi %s2249_s14, %s4106_s14   ;;  %s2205_s13 = sphi %s2247_s13, %s4105_s13   ;;  %s2201_s12 = sphi %s2245_s12, %s4104_s12   ;;  %s2197_s11 = sphi %s2243_s11, %s4096_s11   ;;  %s2193_s10 = sphi %s2241_s10, %s4103_s10   ;;  %s2189_s9 = sphi %s2239_s9, %s4102_s9   ;;  %s2185_s8 = sphi %s2237_s8, %s4101_s8   ;;  %s2181_s7 = sphi %s2235_s7, %s4100_s7   ;;  %s2177_s6 = sphi %s2233_s6, %s4099_s6  }
   0xa   : > { %s1855_s18 = sadd.s32 4294967294, %s2217_s16   ;;  %s26_s19 = sadd.s32 1, %s2209_s14 }
   0xb   : > { %s29_s20 = sadd.s32 1, %s2213_s15  ;;  %p27_p0 = scmp.ge.s32.totalorder %s26_s19, 2 }
   0xc   : > { %s38_s21 = sadd.s32 1, %s2197_s11  ;;  %p45_p1 = scmp.ne.s32.totalorder %s2197_s11, %s2193_s10 }
   0xd   : > { %p46_p2 = scmp.eq.s32.totalorder %s2217_s16, 0  ;;  %s4109_s19 = smov (%p27_p0, %s26_s19), 0 }
   0xe   : > { %3861 = sst [smem:[#allocation11_spill]] %s4109_s19  ;;  %s4111_s20 = smov (!%p27_p0, %s29_s20), %s2213_s15 }
   0xf   : > { %s34_s22 = ssub.s32 %s2209_s14, %s4109_s19  ;;  %p2299_p3 = por %p46_p2, %p45_p1 }
  0x10   : > { %p31_p4 = scmp.ge.s32.totalorder %s4111_s20, 2  ;;  %p51_p5 = scmp.ne.s32.totalorder %s2193_s10, %s2189_s9 }
  0x11   : > { %p52_p6 = scmp.eq.s32.totalorder %s1854_s17, 0  ;;  %s64_s24 = sadd.s32 1, %s2185_s8 }
  0x12   : > { %s4113_s20 = smov (%p31_p4, %s4111_s20), 0  ;;  %p74_p8 = scmp.ne.s32.totalorder %s2185_s8, %s2181_s7 }
  0x13   : > { %3863 = sst [smem:[#allocation12_spill]] %s4113_s20  ;;  %p2307_p7 = por %p52_p6, %p51_p5 }
  0x14   : > { %s33_s26 = ssub.s32 %s2213_s15, %s4113_s20  ;;  %p75_p9 = scmp.eq.s32.totalorder %s1854_s17, 3 }
  0x15   : > { %s35_s27 = sor.u32 %s34_s22, %s33_s26  ;;  %p62_p10 = scmp.eq.s32.totalorder %s33_s26, 0 }
  0x16   : > { %p36_p11 = scmp.eq.s32.totalorder %s35_s27, 0  ;;  %p2315_p12 = por %p75_p9, %p74_p8 }
  0x17   : > { %s2320_s29 = scalar_select %p62_p10, %s2185_s8, %s64_s24  }
  0x18   : > { %s2323_s30 = scalar_select %p36_p11, %s2197_s11, %s38_s21  }
  0x19   : > { %p80_p13 = scmp.ne.s32.totalorder %s2181_s7, %s2177_s6  ;;  %p81_p0 = scmp.eq.s32.totalorder %s1855_s18, 3 }
  0x1a   : > { %3866 = sst [smem:[#allocation13_spill]] %s2323_s30  ;;  %p1886_p1 = scmp.lt.s32.totalorder %s2217_s16, 4 }
  0x1b   : > { %p2328_p2 = por %p81_p0, %p80_p13  ;;  %s101_s3 = sand.u32 1, %s2197_s11  }
  0x1c   : > { %s1858_s4 = sshll.u32 %s101_s3, 10  ;;  %s1872_s5 = sshll.u32 %s2213_s15, 8 }
  0x1d   : > { %s110_s9 = sadd.s32 %s2209_s14, %s1872_s5  ;;  %s105_s17 = scalar_lea.vmem [#allocation4], %s1858_s4 }
  0x1e   : > { %s115_s22 = sshll.u32 %s105_s17, 4  ;;  %s1861_s26 = sshll.u32 %s110_s9, 3  ;;  %s116_s22 = int_to_ptr.vmem [resolvable:$true] %s115_s22 }
  0x1f   : > { %s112_s27 = scalar_lea.hbm %s3835_s0, %s1861_s26  ;;  %p1879_p4 = pnand %p1886_p1, %p2299_p3 }
  0x20   : > { %s113_s18 = sshll.u32 %s112_s27, 4  ;;  %s102_s20 = scalar_lea.sflag [#allocation5], %s101_s3  ;;  %s114_s18 = int_to_ptr.hbm [resolvable:$true] %s113_s18 }
  0x21   : > { %s2219_s19 = smov 256   ;;  %s2220_s30 = smov 128  }
  0x22   : > { %s2221_s11 = smov 8   ;;  %p1862_p5 = scmp.ge.s32.totalorder %s2217_s16, 1 }
  0x23   : > { %1881 = dma.hbm_to_vmem [thread:$0]  (!%p1879_p4), %s114_s18, 16384, %s116_s22, %s102_s20, %s2219_s19, %s2220_s30, %s2221_s11  }
  0x24   : > { %p123_p6 = scmp.lt.s32.totalorder %s2217_s16, 5 }
  0x26   : > { %p124_p8 = pnand %p1862_p5, %p123_p6 }
  0x28   : > { %127 = sbr.rel (%p124_p8) target bundleno = 892 (0x37c), region = 24 }
  0x2d   : > { %s129_s4 = sand.u32 1, %s2193_s10  }
  0x2e   : > { %s1863_s5 = sshll.u32 %s129_s4, 10  ;;  %s130_s9 = scalar_lea.sflag [#allocation5], %s129_s4 }
  0x2f   : > { %s2343_s17 = scalar_lea.vmem [#allocation4], %s1863_s5 }
  0x30   : > { %2168 = dma.done.wait (%p2307_p7), %s130_s9, 16384  }
  0x31   : > { %2170 = vsyncadd (%p2307_p7), %s130_s9, 4294950912  ;;  %s150_s23 = sand.u32 1, %s2181_s7   ;;  %p1865_p3 = scmp.ne.s32.totalorder %s2201_s12, 0 }
  0x32   : > { %s1864_s11 = sshll.u32 %s150_s23, 4 }
  0x33   : > { %s2352_s19 = scalar_lea.vmem [#allocation7], %s1864_s11  ;;  %157 = sbr.rel (%p1865_p3) target bundleno = 59 (0x3b), region = 32 }
  0x38   : > { %v2222_v0 = vmov 0.0  }
  0x39   : > { %158 = vst [vmem:[#allocation2] sm:$0xff] %v2222_v0 }
  0x3a   : > { %159 = vst [vmem:[#allocation3] sm:$0xff] %v2222_v0 }
  0x3b PF: > { %v2356_v1 = vld [vmem:[%s2343_s17 + $0x10] sm:$0xff]  ;;  %v2359_v2 = vld [vmem:[%s2343_s17] sm:$0xff]  ;;  %v2368_v4 = vld [vmem:[%s2343_s17 + $0x18] sm:$0xff]  ;;  %vm678_vm0 = vcmask 130112   ;;  %vm682_vm1 = vcmask 195712   ;;  %vm686_vm2 = vcmask 261312  }
  0x3c   : > { %v2362_v3 = vld [vmem:[%s2343_s17 + $0x20] sm:$0xff]  ;;  %293 = vadd.xlane.f32.xlu1 %v2356_v1  ;;  %289 = vadd.xlane.f32.xlu0 %v2359_v2  ;;  %v2371_v5 = vld [vmem:[%s2343_s17 + $0x8] sm:$0xff]  ;;  %v2380_v7 = vld [vmem:[%s2343_s17 + $0x38] sm:$0xff]  ;;  %vm690_vm3 = vcmask 326912   ;;  %vm694_vm4 = vcmask 392512   ;;  %vm3851_vm5 = vcmask 458112  }
  0x3d   : > { %297 = vadd.xlane.f32.xlu2 %v2362_v3  ;;  %v2374_v6 = vld [vmem:[%s2343_s17 + $0x28] sm:$0xff]  ;;  %v2383_v8 = vld [vmem:[%s2343_s17 + $0x30] sm:$0xff]  ;;  %v2386_v9 = vld [vmem:[%s2343_s17 + $0x40] sm:$0xff]  ;;  %vm702_vm6 = vcmask 523712   ;;  %vm706_vm7 = vcmask 589312   ;;  %vm3852_vm8 = vcmask 654912  }
  0x3e   : > { %v2392_v10 = vld [vmem:[%s2343_s17 + $0x50] sm:$0xff]  ;;  %v2395_v11 = vld [vmem:[%s2343_s17 + $0x48] sm:$0xff]  ;;  %v2398_v12 = vld [vmem:[%s2343_s17 + $0x58] sm:$0xff]  ;;  %vm3854_vm9 = vcmask 720512   ;;  %vm3853_vm10 = vcmask 786112   ;;  %vm722_vm11 = vcmask 851712  }
  0x3f   : > { %v2404_v13 = vld [vmem:[%s2343_s17 + $0x68] sm:$0xff]  ;;  %v2407_v14 = vld [vmem:[%s2343_s17 + $0x60] sm:$0xff]  ;;  %v2410_v15 = vld [vmem:[%s2343_s17 + $0x70] sm:$0xff]  ;;  %vm726_vm12 = vcmask 917312   ;;  %vm730_vm13 = vcmask 982912   ;;  %vm734_vm14 = vcmask 1048512  }
  0x40   : > { %v2416_v16 = vld [vmem:[%s2343_s17 + $0x80] sm:$0xff]  ;;  %v2419_v17 = vld [vmem:[%s2343_s17 + $0x78] sm:$0xff]  ;;  %v2422_v18 = vld [vmem:[%s2343_s17 + $0x88] sm:$0xff]  ;;  %vm3855_vm15 = vcmask 1041409   ;;  %p1866_p7 = scmp.ne.s32.totalorder %s2201_s12, 1 }
  0x41   : > { %v2428_v19 = vld [vmem:[%s2343_s17 + $0x98] sm:$0xff]  ;;  %v2431_v20 = vld [vmem:[%s2343_s17 + $0x90] sm:$0xff]  ;;  %v2434_v21 = vld [vmem:[%s2343_s17 + $0xa0] sm:$0xff] }
  0x42   : > { %v2440_v22 = vld [vmem:[%s2343_s17 + $0xb0] sm:$0xff]  ;;  %v2443_v23 = vld [vmem:[%s2343_s17 + $0xa8] sm:$0xff]  ;;  %v2446_v24 = vld [vmem:[%s2343_s17 + $0xb8] sm:$0xff] }
  0x43   : > { %v2452_v25 = vld [vmem:[%s2343_s17 + $0xc8] sm:$0xff]  ;;  %v2455_v26 = vld [vmem:[%s2343_s17 + $0xc0] sm:$0xff]  ;;  %v2458_v27 = vld [vmem:[%s2343_s17 + $0xd0] sm:$0xff] }
  0x44   : > { %295 = vadd.xlane.f32.xlu1 %v2368_v4  ;;  %291 = vadd.xlane.f32.xlu0 %v2371_v5  ;;  %v2464_v28 = vld [vmem:[%s2343_s17 + $0xe0] sm:$0xff]  ;;  %v2467_v29 = vld [vmem:[%s2343_s17 + $0xd8] sm:$0xff]  ;;  %v2470_v30 = vld [vmem:[%s2343_s17 + $0xe8] sm:$0xff] }
  0x45   : > { %299 = vadd.xlane.f32.xlu2 %v2374_v6  ;;  %v2476_v31 = vld [vmem:[%s2343_s17 + $0xf8] sm:$0xff]  ;;  %v2479_v32 = vld [vmem:[%s2343_s17 + $0xf0] sm:$0xff]  ;;  %v2482_v33 = vld [vmem:[%s2343_s17 + $0x100] sm:$0xff] }
  0x46   : > { %v2488_v34 = vld [vmem:[%s2343_s17 + $0x110] sm:$0xff]  ;;  %v2491_v35 = vld [vmem:[%s2343_s17 + $0x108] sm:$0xff]  ;;  %v2494_v36 = vld [vmem:[%s2343_s17 + $0x118] sm:$0xff] }
  0x47   : > { %3868 = vst [vmem:[#allocation14_spill] sm:$0xff] %v2491_v35  ;;  %v2500_v37 = vld [vmem:[%s2343_s17 + $0x128] sm:$0xff]  ;;  %v2503_v38 = vld [vmem:[%s2343_s17 + $0x120] sm:$0xff]  ;;  %v2506_v39 = vld [vmem:[%s2343_s17 + $0x130] sm:$0xff] }
  0x48   : > { %3869 = vst [vmem:[#allocation15_spill] sm:$0xff] %v2494_v36  ;;  %v2512_v40 = vld [vmem:[%s2343_s17 + $0x140] sm:$0xff]  ;;  %v2515_v41 = vld [vmem:[%s2343_s17 + $0x138] sm:$0xff]  ;;  %v2518_v42 = vld [vmem:[%s2343_s17 + $0x148] sm:$0xff] }
  0x49   : > { %3870 = vst [vmem:[#allocation16_spill] sm:$0xff] %v2500_v37  ;;  %v203_v43 = vld [vmem:[%s2343_s17 + $0x158] sm:$0xff]  ;;  %v2525_v44 = vld [vmem:[%s2343_s17 + $0x150] sm:$0xff]  ;;  %v204_v45 = vld [vmem:[%s2343_s17 + $0x160] sm:$0xff] }
  0x4a   : > { %3871 = vst [vmem:[#allocation17_spill] sm:$0xff] %v2503_v38  ;;  %v206_v49 = vld [vmem:[%s2343_s17 + $0x170] sm:$0xff]  ;;  %v205_v50 = vld [vmem:[%s2343_s17 + $0x168] sm:$0xff]  ;;  %v207_v51 = vld [vmem:[%s2343_s17 + $0x178] sm:$0xff] }
  0x4b   : > { %3872 = vst [vmem:[#allocation18_spill] sm:$0xff] %v2506_v39  ;;  %v209_v55 = vld [vmem:[%s2343_s17 + $0x188] sm:$0xff]  ;;  %v208_v56 = vld [vmem:[%s2343_s17 + $0x180] sm:$0xff]  ;;  %v210_v57 = vld [vmem:[%s2343_s17 + $0x190] sm:$0xff] }
  0x4c   : > { %303 = vadd.xlane.f32.xlu1 %v2380_v7  ;;  %301 = vadd.xlane.f32.xlu0 %v2383_v8  ;;  %3873 = vst [vmem:[#allocation19_spill] sm:$0xff] %v2512_v40  ;;  %v212_v61 = vld [vmem:[%s2343_s17 + $0x1a0] sm:$0xff]  ;;  %v211_v62 = vld [vmem:[%s2343_s17 + $0x198] sm:$0xff]  ;;  %v213_v63 = vld [vmem:[%s2343_s17 + $0x1a8] sm:$0xff] }
  0x4d   : > { %305 = vadd.xlane.f32.xlu2 %v2386_v9  ;;  %3874 = vst [vmem:[#allocation20_spill] sm:$0xff] %v2515_v41 }
  0x4e   : > { %3875 = vst [vmem:[#allocation21_spill] sm:$0xff] %v2518_v42 }
  0x4f   : > { %3876 = vst [vmem:[#allocation22_spill] sm:$0xff] %v2525_v44 }
  0x54   : > { %309 = vadd.xlane.f32.xlu1 %v2392_v10  ;;  %307 = vadd.xlane.f32.xlu0 %v2395_v11 }
  0x55   : > { %311 = vadd.xlane.f32.xlu2 %v2398_v12 }
  0x5c   : > { %315 = vadd.xlane.f32.xlu1 %v2404_v13  ;;  %313 = vadd.xlane.f32.xlu0 %v2407_v14 }
  0x5d   : > { %317 = vadd.xlane.f32.xlu2 %v2410_v15 }
  0x64   : > { %321 = vadd.xlane.f32.xlu1 %v2416_v16  ;;  %319 = vadd.xlane.f32.xlu0 %v2419_v17 }
  0x65   : > { %323 = vadd.xlane.f32.xlu2 %v2422_v18 }
  0x6c   : > { %327 = vadd.xlane.f32.xlu1 %v2428_v19  ;;  %325 = vadd.xlane.f32.xlu0 %v2431_v20 }
  0x6d   : > { %329 = vadd.xlane.f32.xlu2 %v2434_v21 }
  0x74   : > { %333 = vadd.xlane.f32.xlu1 %v2440_v22  ;;  %331 = vadd.xlane.f32.xlu0 %v2443_v23 }
  0x75   : > { %335 = vadd.xlane.f32.xlu2 %v2446_v24 }
  0x7c   : > { %339 = vadd.xlane.f32.xlu1 %v2452_v25  ;;  %337 = vadd.xlane.f32.xlu0 %v2455_v26 }
  0x7d   : > { %341 = vadd.xlane.f32.xlu2 %v2458_v27 }
  0x84   : > { %345 = vadd.xlane.f32.xlu1 %v2464_v28  ;;  %343 = vadd.xlane.f32.xlu0 %v2467_v29 }
  0x85   : > { %347 = vadd.xlane.f32.xlu2 %v2470_v30 }
  0x8c   : > { %351 = vadd.xlane.f32.xlu1 %v2476_v31  ;;  %349 = vadd.xlane.f32.xlu0 %v2479_v32 }
  0x8d   : > { %353 = vadd.xlane.f32.xlu2 %v2482_v33 }
  0x94   : > { %357 = vadd.xlane.f32.xlu1 %v2488_v34  ;;  %355 = vadd.xlane.f32.xlu0 %v2491_v35  ;;  %v242_v35 = vld [vmem:[%s2343_s17 + $0x290] sm:$0xff] }
  0x95   : > { %359 = vadd.xlane.f32.xlu2 %v2494_v36  ;;  %v234_v36 = vld [vmem:[%s2343_s17 + $0x250] sm:$0xff] }
  0x9c   : > { %363 = vadd.xlane.f32.xlu1 %v2500_v37  ;;  %361 = vadd.xlane.f32.xlu0 %v2503_v38  ;;  %v229_v38 = vld [vmem:[%s2343_s17 + $0x228] sm:$0xff]  ;;  %v232_v37 = vld [vmem:[%s2343_s17 + $0x240] sm:$0xff] }
  0x9d   : > { %365 = vadd.xlane.f32.xlu2 %v2506_v39  ;;  %v230_v39 = vld [vmem:[%s2343_s17 + $0x230] sm:$0xff] }
  0xa4   : > { %369 = vadd.xlane.f32.xlu1 %v2512_v40  ;;  %367 = vadd.xlane.f32.xlu0 %v2515_v41  ;;  %v222_v41 = vld [vmem:[%s2343_s17 + $0x1f0] sm:$0xff] }
  0xa5   : > { %371 = vadd.xlane.f32.xlu2 %v2518_v42  ;;  %v220_v42 = vld [vmem:[%s2343_s17 + $0x1e0] sm:$0xff]  ;;  %v226_v40 = vld [vmem:[%s2343_s17 + $0x210] sm:$0xff] }
  0xac   : > { %375 = vadd.xlane.f32.xlu1 %v203_v43  ;;  %373 = vadd.xlane.f32.xlu0 %v2525_v44  ;;  %v221_v44 = vld [vmem:[%s2343_s17 + $0x1e8] sm:$0xff] }
  0xad   : > { %377 = vadd.xlane.f32.xlu2 %v204_v45 }
  0xaf   : > { %v2529_v46 = vpop.xlane.xlu1 %293  ;;  %v2531_v47 = vpop.xlane.xlu0 %289 }
  0xb0   : > { %v2533_v48 = vpop.xlane.xlu2 %297 }
  0xb4   : > { %381 = vadd.xlane.f32.xlu1 %v206_v49  ;;  %379 = vadd.xlane.f32.xlu0 %v205_v50  ;;  %v215_v49 = vld [vmem:[%s2343_s17 + $0x1b8] sm:$0xff]  ;;  %v214_v50 = vld [vmem:[%s2343_s17 + $0x1b0] sm:$0xff] }
  0xb5   : > { %383 = vadd.xlane.f32.xlu2 %v207_v51  ;;  %v216_v51 = vld [vmem:[%s2343_s17 + $0x1c0] sm:$0xff] }
  0xb7   : > { %v2538_v52 = vpop.xlane.xlu1 %295  ;;  %v2540_v53 = vpop.xlane.xlu0 %291 }
  0xb8   : > { %v2542_v54 = vpop.xlane.xlu2 %299 }
  0xbc   : > { %387 = vadd.xlane.f32.xlu1 %v209_v55  ;;  %385 = vadd.xlane.f32.xlu0 %v208_v56 }
  0xbd   : > { %389 = vadd.xlane.f32.xlu2 %v210_v57 }
  0xbf   : > { %v2547_v58 = vpop.xlane.xlu1 %303  ;;  %v2549_v59 = vpop.xlane.xlu0 %301 }
  0xc0   : > { %v2551_v60 = vpop.xlane.xlu2 %305 }
  0xc4   : > { %393 = vadd.xlane.f32.xlu1 %v212_v61  ;;  %391 = vadd.xlane.f32.xlu0 %v211_v62  ;;  %v218_v61 = vld [vmem:[%s2343_s17 + $0x1d0] sm:$0xff]  ;;  %v217_v62 = vld [vmem:[%s2343_s17 + $0x1c8] sm:$0xff] }
  0xc5   : > { %395 = vadd.xlane.f32.xlu2 %v213_v63  ;;  %v219_v63 = vld [vmem:[%s2343_s17 + $0x1d8] sm:$0xff] }
  0xc7   : > { %v2556_v0 = vpop.xlane.xlu1 %309  ;;  %v2558_v43 = vpop.xlane.xlu0 %307 }
  0xc8   : > { %3877 = vst [vmem:[#allocation23_spill] sm:$0xff] %v2556_v0  ;;  %v2560_v45 = vpop.xlane.xlu2 %311  ;;  %v231_v0 = vld [vmem:[%s2343_s17 + $0x238] sm:$0xff] }
  0xc9   : > { %3878 = vst [vmem:[#allocation24_spill] sm:$0xff] %v2558_v43  ;;  %v243_v43 = vld [vmem:[%s2343_s17 + $0x298] sm:$0xff] }
  0xca   : > { %3879 = vst [vmem:[#allocation25_spill] sm:$0xff] %v2560_v45  ;;  %v228_v45 = vld [vmem:[%s2343_s17 + $0x220] sm:$0xff] }
  0xcc   : > { %399 = vadd.xlane.f32.xlu1 %v215_v49  ;;  %397 = vadd.xlane.f32.xlu0 %v214_v50 }
  0xcd   : > { %401 = vadd.xlane.f32.xlu2 %v216_v51 }
  0xcf   : > { %v2565_v55 = vpop.xlane.xlu1 %315  ;;  %v2567_v56 = vpop.xlane.xlu0 %313 }
  0xd0   : > { %3880 = vst [vmem:[#allocation26_spill] sm:$0xff] %v2565_v55  ;;  %v2569_v57 = vpop.xlane.xlu2 %317  ;;  %v223_v55 = vld [vmem:[%s2343_s17 + $0x1f8] sm:$0xff] }
  0xd1   : > { %3881 = vst [vmem:[#allocation27_spill] sm:$0xff] %v2567_v56  ;;  %v227_v56 = vld [vmem:[%s2343_s17 + $0x218] sm:$0xff] }
  0xd2   : > { %3882 = vst [vmem:[#allocation28_spill] sm:$0xff] %v2569_v57  ;;  %v224_v57 = vld [vmem:[%s2343_s17 + $0x200] sm:$0xff] }
  0xd4   : > { %405 = vadd.xlane.f32.xlu1 %v218_v61  ;;  %403 = vadd.xlane.f32.xlu0 %v217_v62 }
  0xd5   : > { %407 = vadd.xlane.f32.xlu2 %v219_v63 }
  0xd7   : > { %v2574_v49 = vpop.xlane.xlu1 %321  ;;  %v2576_v50 = vpop.xlane.xlu0 %319 }
  0xd8   : > { %3883 = vst [vmem:[#allocation29_spill] sm:$0xff] %v2576_v50  ;;  %v2578_v51 = vpop.xlane.xlu2 %323  ;;  %v225_v50 = vld [vmem:[%s2343_s17 + $0x208] sm:$0xff] }
  0xdc   : > { %411 = vadd.xlane.f32.xlu1 %v221_v44  ;;  %409 = vadd.xlane.f32.xlu0 %v220_v42 }
  0xdd   : > { %413 = vadd.xlane.f32.xlu2 %v222_v41 }
  0xdf   : > { %v2583_v61 = vpop.xlane.xlu1 %327  ;;  %v2585_v62 = vpop.xlane.xlu0 %325 }
  0xe0   : > { %v2587_v63 = vpop.xlane.xlu2 %329 }
  0xe4   : > { %417 = vadd.xlane.f32.xlu1 %v224_v57  ;;  %415 = vadd.xlane.f32.xlu0 %v223_v55 }
  0xe5   : > { %419 = vadd.xlane.f32.xlu2 %v225_v50 }
  0xe7   : > { %v2592_v44 = vpop.xlane.xlu1 %333  ;;  %v2594_v42 = vpop.xlane.xlu0 %331 }
  0xe8   : > { %v2596_v41 = vpop.xlane.xlu2 %335 }
  0xe9   : > { %3884 = vst [vmem:[#allocation30_spill] sm:$0xff] %v2596_v41  ;;  %v285_v41 = vld [vmem:[%s2343_s17 + $0x3e8] sm:$0xff] }
  0xec   : > { %423 = vadd.xlane.f32.xlu1 %v227_v56  ;;  %421 = vadd.xlane.f32.xlu0 %v226_v40 }
  0xed   : > { %425 = vadd.xlane.f32.xlu2 %v228_v45 }
  0xef   : > { %v2601_v57 = vpop.xlane.xlu1 %339  ;;  %v2603_v55 = vpop.xlane.xlu0 %337 }
  0xf0   : > { %3885 = vst [vmem:[#allocation31_spill] sm:$0xff] %v2601_v57  ;;  %v2605_v50 = vpop.xlane.xlu2 %341  ;;  %v233_v57 = vld [vmem:[%s2343_s17 + $0x248] sm:$0xff] }
  0xf1   : > { %3886 = vst [vmem:[#allocation32_spill] sm:$0xff] %v2603_v55  ;;  %v241_v55 = vld [vmem:[%s2343_s17 + $0x288] sm:$0xff] }
  0xf2   : > { %3887 = vst [vmem:[#allocation33_spill] sm:$0xff] %v2605_v50  ;;  %v235_v50 = vld [vmem:[%s2343_s17 + $0x258] sm:$0xff] }
  0xf4   : > { %429 = vadd.xlane.f32.xlu1 %v230_v39  ;;  %427 = vadd.xlane.f32.xlu0 %v229_v38 }
  0xf5   : > { %431 = vadd.xlane.f32.xlu2 %v231_v0 }
  0xf7   : > { %v2610_v56 = vpop.xlane.xlu1 %345  ;;  %v2612_v40 = vpop.xlane.xlu0 %343 }
  0xf8   : > { %3888 = vst [vmem:[#allocation34_spill] sm:$0xff] %v2610_v56  ;;  %v2614_v45 = vpop.xlane.xlu2 %347  ;;  %v236_v56 = vld [vmem:[%s2343_s17 + $0x260] sm:$0xff] }
  0xf9   : > { %3889 = vst [vmem:[#allocation35_spill] sm:$0xff] %v2612_v40  ;;  %v237_v40 = vld [vmem:[%s2343_s17 + $0x268] sm:$0xff] }
  0xfa   : > { %3890 = vst [vmem:[#allocation36_spill] sm:$0xff] %v2614_v45  ;;  %v238_v45 = vld [vmem:[%s2343_s17 + $0x270] sm:$0xff] }
  0xfc   : > { %435 = vadd.xlane.f32.xlu1 %v233_v57  ;;  %433 = vadd.xlane.f32.xlu0 %v232_v37 }
  0xfd   : > { %437 = vadd.xlane.f32.xlu2 %v234_v36 }
  0xff   : > { %v2619_v39 = vpop.xlane.xlu1 %351  ;;  %v2621_v38 = vpop.xlane.xlu0 %349 }
 0x100   : > { %3891 = vst [vmem:[#allocation37_spill] sm:$0xff] %v2619_v39  ;;  %v2623_v0 = vpop.xlane.xlu2 %353  ;;  %v239_v39 = vld [vmem:[%s2343_s17 + $0x278] sm:$0xff] }
 0x101   : > { %3892 = vst [vmem:[#allocation38_spill] sm:$0xff] %v2621_v38  ;;  %v240_v38 = vld [vmem:[%s2343_s17 + $0x280] sm:$0xff] }
 0x104   : > { %441 = vadd.xlane.f32.xlu1 %v236_v56  ;;  %439 = vadd.xlane.f32.xlu0 %v235_v50 }
 0x105   : > { %443 = vadd.xlane.f32.xlu2 %v237_v40 }
 0x107   : > { %v2628_v57 = vpop.xlane.xlu1 %357  ;;  %v2630_v37 = vpop.xlane.xlu0 %355 }
 0x108   : > { %v2632_v36 = vpop.xlane.xlu2 %359 }
 0x109   : > { %3893 = vst [vmem:[#allocation39_spill] sm:$0xff] %v2632_v36  ;;  %v244_v36 = vld [vmem:[%s2343_s17 + $0x2a0] sm:$0xff] }
 0x10c   : > { %447 = vadd.xlane.f32.xlu1 %v239_v39  ;;  %445 = vadd.xlane.f32.xlu0 %v238_v45 }
 0x10d   : > { %449 = vadd.xlane.f32.xlu2 %v240_v38 }
 0x10f   : > { %v2637_v56 = vpop.xlane.xlu1 %363  ;;  %v2639_v50 = vpop.xlane.xlu0 %361 }
 0x110   : > { %3894 = vst [vmem:[#allocation40_spill] sm:$0xff] %v2637_v56  ;;  %v2641_v40 = vpop.xlane.xlu2 %365  ;;  %v245_v56 = vld [vmem:[%s2343_s17 + $0x2a8] sm:$0xff] }
 0x111   : > { %3895 = vst [vmem:[#allocation41_spill] sm:$0xff] %v2639_v50  ;;  %v246_v50 = vld [vmem:[%s2343_s17 + $0x2b0] sm:$0xff] }
 0x112   : > { %3896 = vst [vmem:[#allocation42_spill] sm:$0xff] %v2641_v40  ;;  %v247_v40 = vld [vmem:[%s2343_s17 + $0x2b8] sm:$0xff] }
 0x114   : > { %453 = vadd.xlane.f32.xlu1 %v242_v35  ;;  %451 = vadd.xlane.f32.xlu0 %v241_v55 }
 0x115   : > { %455 = vadd.xlane.f32.xlu2 %v243_v43 }
 0x117   : > { %v2646_v39 = vpop.xlane.xlu1 %369  ;;  %v2648_v45 = vpop.xlane.xlu0 %367 }
 0x118   : > { %3897 = vst [vmem:[#allocation43_spill] sm:$0xff] %v2646_v39  ;;  %v2650_v38 = vpop.xlane.xlu2 %371  ;;  %v248_v39 = vld [vmem:[%s2343_s17 + $0x2c0] sm:$0xff] }
 0x119   : > { %3898 = vst [vmem:[#allocation44_spill] sm:$0xff] %v2648_v45  ;;  %v249_v45 = vld [vmem:[%s2343_s17 + $0x2c8] sm:$0xff] }
 0x11a   : > { %3899 = vst [vmem:[#allocation45_spill] sm:$0xff] %v2650_v38  ;;  %v250_v38 = vld [vmem:[%s2343_s17 + $0x2d0] sm:$0xff] }
 0x11c   : > { %459 = vadd.xlane.f32.xlu1 %v245_v56  ;;  %457 = vadd.xlane.f32.xlu0 %v244_v36 }
 0x11d   : > { %461 = vadd.xlane.f32.xlu2 %v246_v50 }
 0x11f   : > { %v2655_v35 = vpop.xlane.xlu1 %375  ;;  %v2657_v55 = vpop.xlane.xlu0 %373 }
 0x120   : > { %3900 = vst [vmem:[#allocation46_spill] sm:$0xff] %v2655_v35  ;;  %v2659_v43 = vpop.xlane.xlu2 %377  ;;  %v251_v35 = vld [vmem:[%s2343_s17 + $0x2d8] sm:$0xff] }
 0x121   : > { %3901 = vst [vmem:[#allocation47_spill] sm:$0xff] %v2657_v55  ;;  %v252_v55 = vld [vmem:[%s2343_s17 + $0x2e0] sm:$0xff] }
 0x122   : > { %3902 = vst [vmem:[#allocation48_spill] sm:$0xff] %v2659_v43  ;;  %v253_v43 = vld [vmem:[%s2343_s17 + $0x2e8] sm:$0xff] }
 0x124   : > { %465 = vadd.xlane.f32.xlu1 %v248_v39  ;;  %463 = vadd.xlane.f32.xlu0 %v247_v40 }
 0x125   : > { %467 = vadd.xlane.f32.xlu2 %v249_v45 }
 0x127   : > { %v2664_v56 = vpop.xlane.xlu1 %381  ;;  %v2666_v36 = vpop.xlane.xlu0 %379 }
 0x128   : > { %3903 = vst [vmem:[#allocation49_spill] sm:$0xff] %v2664_v56  ;;  %v2668_v50 = vpop.xlane.xlu2 %383  ;;  %v254_v56 = vld [vmem:[%s2343_s17 + $0x2f0] sm:$0xff] }
 0x129   : > { %3904 = vst [vmem:[#allocation50_spill] sm:$0xff] %v2666_v36  ;;  %v255_v36 = vld [vmem:[%s2343_s17 + $0x2f8] sm:$0xff] }
 0x12a   : > { %3905 = vst [vmem:[#allocation51_spill] sm:$0xff] %v2668_v50  ;;  %v257_v50 = vld [vmem:[%s2343_s17 + $0x308] sm:$0xff] }
 0x12c   : > { %471 = vadd.xlane.f32.xlu1 %v251_v35  ;;  %469 = vadd.xlane.f32.xlu0 %v250_v38 }
 0x12d   : > { %473 = vadd.xlane.f32.xlu2 %v252_v55 }
 0x12f   : > { %v2673_v39 = vpop.xlane.xlu1 %387  ;;  %v2675_v40 = vpop.xlane.xlu0 %385 }
 0x130   : > { %3906 = vst [vmem:[#allocation52_spill] sm:$0xff] %v2673_v39  ;;  %v2677_v45 = vpop.xlane.xlu2 %389  ;;  %v256_v39 = vld [vmem:[%s2343_s17 + $0x300] sm:$0xff] }
 0x131   : > { %3907 = vst [vmem:[#allocation53_spill] sm:$0xff] %v2675_v40  ;;  %v258_v40 = vld [vmem:[%s2343_s17 + $0x310] sm:$0xff] }
 0x132   : > { %3908 = vst [vmem:[#allocation54_spill] sm:$0xff] %v2677_v45  ;;  %v259_v45 = vld [vmem:[%s2343_s17 + $0x318] sm:$0xff] }
 0x134   : > { %477 = vadd.xlane.f32.xlu1 %v254_v56  ;;  %475 = vadd.xlane.f32.xlu0 %v253_v43 }
 0x135   : > { %479 = vadd.xlane.f32.xlu2 %v255_v36 }
 0x137   : > { %v2682_v35 = vpop.xlane.xlu1 %393  ;;  %v2684_v38 = vpop.xlane.xlu0 %391 }
 0x138   : > { %3909 = vst [vmem:[#allocation55_spill] sm:$0xff] %v2682_v35  ;;  %v2686_v55 = vpop.xlane.xlu2 %395  ;;  %v260_v35 = vld [vmem:[%s2343_s17 + $0x320] sm:$0xff] }
 0x139   : > { %3910 = vst [vmem:[#allocation56_spill] sm:$0xff] %v2684_v38  ;;  %v261_v38 = vld [vmem:[%s2343_s17 + $0x328] sm:$0xff] }
 0x13a   : > { %3911 = vst [vmem:[#allocation57_spill] sm:$0xff] %v2686_v55  ;;  %v262_v55 = vld [vmem:[%s2343_s17 + $0x330] sm:$0xff] }
 0x13c   : > { %483 = vadd.xlane.f32.xlu1 %v257_v50  ;;  %481 = vadd.xlane.f32.xlu0 %v256_v39 }
 0x13d   : > { %485 = vadd.xlane.f32.xlu2 %v258_v40 }
 0x13f   : > { %v2691_v56 = vpop.xlane.xlu1 %399  ;;  %v2693_v43 = vpop.xlane.xlu0 %397 }
 0x140   : > { %3912 = vst [vmem:[#allocation58_spill] sm:$0xff] %v2691_v56  ;;  %v2695_v36 = vpop.xlane.xlu2 %401  ;;  %v263_v56 = vld [vmem:[%s2343_s17 + $0x338] sm:$0xff] }
 0x141   : > { %3913 = vst [vmem:[#allocation59_spill] sm:$0xff] %v2693_v43  ;;  %v264_v43 = vld [vmem:[%s2343_s17 + $0x340] sm:$0xff] }
 0x142   : > { %3914 = vst [vmem:[#allocation60_spill] sm:$0xff] %v2695_v36  ;;  %v265_v36 = vld [vmem:[%s2343_s17 + $0x348] sm:$0xff] }
 0x144   : > { %489 = vadd.xlane.f32.xlu1 %v260_v35  ;;  %487 = vadd.xlane.f32.xlu0 %v259_v45 }
 0x145   : > { %491 = vadd.xlane.f32.xlu2 %v261_v38 }
 0x147   : > { %v2700_v50 = vpop.xlane.xlu1 %405  ;;  %v2702_v39 = vpop.xlane.xlu0 %403 }
 0x148   : > { %3915 = vst [vmem:[#allocation61_spill] sm:$0xff] %v2700_v50  ;;  %v2704_v40 = vpop.xlane.xlu2 %407  ;;  %v266_v50 = vld [vmem:[%s2343_s17 + $0x350] sm:$0xff] }
 0x149   : > { %3916 = vst [vmem:[#allocation62_spill] sm:$0xff] %v2702_v39  ;;  %v267_v39 = vld [vmem:[%s2343_s17 + $0x358] sm:$0xff] }
 0x14a   : > { %3917 = vst [vmem:[#allocation63_spill] sm:$0xff] %v2704_v40  ;;  %v268_v40 = vld [vmem:[%s2343_s17 + $0x360] sm:$0xff] }
 0x14c   : > { %495 = vadd.xlane.f32.xlu1 %v263_v56  ;;  %493 = vadd.xlane.f32.xlu0 %v262_v55 }
 0x14d   : > { %497 = vadd.xlane.f32.xlu2 %v264_v43 }
 0x14f   : > { %v2709_v35 = vpop.xlane.xlu1 %411  ;;  %v2711_v45 = vpop.xlane.xlu0 %409 }
 0x150   : > { %3918 = vst [vmem:[#allocation64_spill] sm:$0xff] %v2709_v35  ;;  %v2713_v38 = vpop.xlane.xlu2 %413  ;;  %v269_v35 = vld [vmem:[%s2343_s17 + $0x368] sm:$0xff] }
 0x151   : > { %3919 = vst [vmem:[#allocation65_spill] sm:$0xff] %v2711_v45  ;;  %v270_v45 = vld [vmem:[%s2343_s17 + $0x370] sm:$0xff] }
 0x152   : > { %3920 = vst [vmem:[#allocation66_spill] sm:$0xff] %v2713_v38  ;;  %v272_v38 = vld [vmem:[%s2343_s17 + $0x380] sm:$0xff] }
 0x154   : > { %501 = vadd.xlane.f32.xlu1 %v266_v50  ;;  %499 = vadd.xlane.f32.xlu0 %v265_v36 }
 0x155   : > { %503 = vadd.xlane.f32.xlu2 %v267_v39 }
 0x157   : > { %v2718_v56 = vpop.xlane.xlu1 %417  ;;  %v2720_v55 = vpop.xlane.xlu0 %415 }
 0x158   : > { %3921 = vst [vmem:[#allocation67_spill] sm:$0xff] %v2718_v56  ;;  %v2722_v43 = vpop.xlane.xlu2 %419  ;;  %v271_v56 = vld [vmem:[%s2343_s17 + $0x378] sm:$0xff] }
 0x159   : > { %3922 = vst [vmem:[#allocation68_spill] sm:$0xff] %v2720_v55  ;;  %v273_v55 = vld [vmem:[%s2343_s17 + $0x388] sm:$0xff] }
 0x15a   : > { %3923 = vst [vmem:[#allocation69_spill] sm:$0xff] %v2722_v43  ;;  %v274_v43 = vld [vmem:[%s2343_s17 + $0x390] sm:$0xff] }
 0x15c   : > { %507 = vadd.xlane.f32.xlu1 %v269_v35  ;;  %505 = vadd.xlane.f32.xlu0 %v268_v40 }
 0x15d   : > { %509 = vadd.xlane.f32.xlu2 %v270_v45 }
 0x15f   : > { %v2727_v50 = vpop.xlane.xlu1 %423  ;;  %v2729_v36 = vpop.xlane.xlu0 %421 }
 0x160   : > { %3924 = vst [vmem:[#allocation70_spill] sm:$0xff] %v2727_v50  ;;  %v2731_v39 = vpop.xlane.xlu2 %425  ;;  %v275_v50 = vld [vmem:[%s2343_s17 + $0x398] sm:$0xff] }
 0x161   : > { %3925 = vst [vmem:[#allocation71_spill] sm:$0xff] %v2729_v36  ;;  %v276_v36 = vld [vmem:[%s2343_s17 + $0x3a0] sm:$0xff] }
 0x162   : > { %3926 = vst [vmem:[#allocation72_spill] sm:$0xff] %v2731_v39  ;;  %v277_v39 = vld [vmem:[%s2343_s17 + $0x3a8] sm:$0xff] }
 0x164   : > { %513 = vadd.xlane.f32.xlu1 %v272_v38  ;;  %511 = vadd.xlane.f32.xlu0 %v271_v56 }
 0x165   : > { %515 = vadd.xlane.f32.xlu2 %v273_v55 }
 0x167   : > { %v2736_v35 = vpop.xlane.xlu1 %429  ;;  %v2738_v40 = vpop.xlane.xlu0 %427 }
 0x168   : > { %3927 = vst [vmem:[#allocation73_spill] sm:$0xff] %v2736_v35  ;;  %v2740_v45 = vpop.xlane.xlu2 %431  ;;  %v278_v35 = vld [vmem:[%s2343_s17 + $0x3b0] sm:$0xff] }
 0x169   : > { %3928 = vst [vmem:[#allocation74_spill] sm:$0xff] %v2738_v40  ;;  %v279_v40 = vld [vmem:[%s2343_s17 + $0x3b8] sm:$0xff] }
 0x16a   : > { %3929 = vst [vmem:[#allocation75_spill] sm:$0xff] %v2740_v45  ;;  %v280_v45 = vld [vmem:[%s2343_s17 + $0x3c0] sm:$0xff] }
 0x16c   : > { %519 = vadd.xlane.f32.xlu1 %v275_v50  ;;  %517 = vadd.xlane.f32.xlu0 %v274_v43 }
 0x16d   : > { %521 = vadd.xlane.f32.xlu2 %v276_v36 }
 0x16f   : > { %v2745_v38 = vpop.xlane.xlu1 %435  ;;  %v2747_v56 = vpop.xlane.xlu0 %433 }
 0x170   : > { %3930 = vst [vmem:[#allocation76_spill] sm:$0xff] %v2745_v38  ;;  %v2749_v55 = vpop.xlane.xlu2 %437  ;;  %v281_v38 = vld [vmem:[%s2343_s17 + $0x3c8] sm:$0xff] }
 0x171   : > { %3931 = vst [vmem:[#allocation77_spill] sm:$0xff] %v2747_v56  ;;  %v282_v56 = vld [vmem:[%s2343_s17 + $0x3d0] sm:$0xff] }
 0x172   : > { %3932 = vst [vmem:[#allocation78_spill] sm:$0xff] %v2749_v55 }
 0x174   : > { %525 = vadd.xlane.f32.xlu1 %v278_v35  ;;  %523 = vadd.xlane.f32.xlu0 %v277_v39 }
 0x175   : > { %527 = vadd.xlane.f32.xlu2 %v279_v40  ;;  %v284_v40 = vld [vmem:[%s2343_s17 + $0x3e0] sm:$0xff] }
 0x177   : > { %v2754_v50 = vpop.xlane.xlu1 %441  ;;  %v2756_v43 = vpop.xlane.xlu0 %439 }
 0x178   : > { %3933 = vst [vmem:[#allocation79_spill] sm:$0xff] %v2754_v50  ;;  %v2758_v36 = vpop.xlane.xlu2 %443  ;;  %v283_v50 = vld [vmem:[%s2343_s17 + $0x3d8] sm:$0xff] }
 0x179   : > { %3934 = vst [vmem:[#allocation80_spill] sm:$0xff] %v2756_v43 }
 0x17a   : > { %3935 = vst [vmem:[#allocation81_spill] sm:$0xff] %v2758_v36 }
 0x17c   : > { %531 = vadd.xlane.f32.xlu1 %v281_v38  ;;  %529 = vadd.xlane.f32.xlu0 %v280_v45  ;;  %v287_v45 = vld [vmem:[%s2343_s17 + $0x3f8] sm:$0xff] }
 0x17d   : > { %533 = vadd.xlane.f32.xlu2 %v282_v56  ;;  %v286_v56 = vld [vmem:[%s2343_s17 + $0x3f0] sm:$0xff] }
 0x17f   : > { %v2763_v55 = vpop.xlane.xlu1 %447  ;;  %v2765_v35 = vpop.xlane.xlu0 %445 }
 0x180   : > { %3936 = vst [vmem:[#allocation82_spill] sm:$0xff] %v2763_v55  ;;  %v2767_v39 = vpop.xlane.xlu2 %449  ;;  %v971_v55 = vmul.f32 %v2359_v2, %v2359_v2 }
 0x181   : > { %3937 = vst [vmem:[#allocation83_spill] sm:$0xff] %v2765_v35 }
 0x182   : > { %3938 = vst [vmem:[#allocation84_spill] sm:$0xff] %v2767_v39 }
 0x184   : > { %537 = vadd.xlane.f32.xlu1 %v284_v40  ;;  %535 = vadd.xlane.f32.xlu0 %v283_v50  ;;  %v972_v40 = vmul.f32 %v2371_v5, %v2371_v5  ;;  %v977_v5 = vmul.f32 %v2383_v8, %v2383_v8 }
 0x185   : > { %539 = vadd.xlane.f32.xlu2 %v285_v41  ;;  %v973_v41 = vmul.f32 %v2356_v1, %v2356_v1  ;;  %v975_v1 = vmul.f32 %v2362_v3, %v2362_v3  ;;  %v980_v3 = vmul.f32 %v2395_v11, %v2395_v11  ;;  %v983_v11 = vmul.f32 %v2407_v14, %v2407_v14 }
 0x187   : > { %v2772_v36 = vpop.xlane.xlu1 %453  ;;  %v2774_v43 = vpop.xlane.xlu0 %451 }
 0x188   : > { %v2776_v38 = vpop.xlane.xlu2 %455 }
 0x189   : > { %3939 = vst [vmem:[#allocation85_spill] sm:$0xff] %v2776_v38  ;;  %v974_v38 = vmul.f32 %v2368_v4, %v2368_v4 }
 0x18c   : > { %543 = vadd.xlane.f32.xlu1 %v287_v45  ;;  %541 = vadd.xlane.f32.xlu0 %v286_v56  ;;  %v976_v56 = vmul.f32 %v2374_v6, %v2374_v6  ;;  %v978_v6 = vmul.f32 %v2380_v7, %v2380_v7  ;;  %v981_v7 = vmul.f32 %v2392_v10, %v2392_v10 }
 0x18d   : > { %1099 = vadd.xlane.f32.xlu2 %v971_v55 }
 0x18f   : > { %v2782_v35 = vpop.xlane.xlu1 %459  ;;  %v2784_v39 = vpop.xlane.xlu0 %457 }
 0x190   : > { %v2786_v50 = vpop.xlane.xlu2 %461 }
 0x194   : > { %1103 = vadd.xlane.f32.xlu1 %v973_v41  ;;  %1101 = vadd.xlane.f32.xlu0 %v972_v40  ;;  %v979_v40 = vmul.f32 %v2386_v9, %v2386_v9  ;;  %v982_v9 = vmul.f32 %v2398_v12, %v2398_v12 }
 0x195   : > { %1105 = vadd.xlane.f32.xlu2 %v974_v38 }
 0x197   : > { %v2794_v2 = vpop.xlane.xlu1 %465  ;;  %v2796_v55 = vpop.xlane.xlu0 %463 }
 0x198   : > { %v2798_v45 = vpop.xlane.xlu2 %467 }
 0x199   : > { %3940 = vst [vmem:[#allocation86_spill] sm:$0xff] %v2798_v45  ;;  %v673_v45 = vlaneseq }
 0x19c   : > { %1109 = vadd.xlane.f32.xlu1 %v976_v56  ;;  %1107 = vadd.xlane.f32.xlu0 %v975_v1  ;;  %v2822_v1 = vand.u32 127, %v673_v45 }
 0x19d   : > { %1111 = vadd.xlane.f32.xlu2 %v977_v5 }
 0x19e   : > { %v675_v10 = vperm.slane %v2531_v47, %v2822_v1  ;;  %v2847_v14 = vadd.s32 4294967272, %v2822_v1  ;;  %v736_v47 = vperm.slane %v2574_v49, %v2822_v1 }
 0x19f   : > { %v2806_v4 = vpop.xlane.xlu1 %471  ;;  %v2808_v38 = vpop.xlane.xlu0 %469 }
 0x1a0   : > { %3941 = vst [vmem:[#allocation87_spill] sm:$0xff] %v2806_v4  ;;  %v2810_v41 = vpop.xlane.xlu2 %473 }
 0x1a1   : > { %3942 = vst [vmem:[#allocation88_spill] sm:$0xff] %v2808_v38 }
 0x1a2   : > { %3943 = vst [vmem:[#allocation89_spill] sm:$0xff] %v2810_v41  ;;  %v3954_v41 = vld [vmem:[#allocation15_spill] sm:$0xff] }
 0x1a3   : > { %v3016_v4 = vmul.f32 %v3954_v41, %v3954_v41  ;;  %v3959_v41 = vld [vmem:[#allocation41_spill] sm:$0xff] }
 0x1a4   : > { %1115 = vadd.xlane.f32.xlu1 %v979_v40  ;;  %1113 = vadd.xlane.f32.xlu0 %v978_v6  ;;  %v2833_v40 = vadd.s32 4294967288, %v2822_v1  ;;  %v2838_v6 = vadd.s32 4294967280, %v2822_v1 }
 0x1a5   : > { %1117 = vadd.xlane.f32.xlu2 %v980_v3 }
 0x1a6   : > { %v677_v45 = vperm.slane %v2540_v53, %v2833_v40  ;;  %v984_v53 = vmul.f32 %v2404_v13, %v2404_v13  ;;  %v2867_v13 = vadd.s32 4294967264, %v2822_v1  ;;  %v739_v49 = vperm.slane %v2585_v62, %v2838_v6 }
 0x1a7   : > { %v2818_v8 = vpop.xlane.xlu1 %477  ;;  %v2820_v56 = vpop.xlane.xlu0 %475  ;;  %v2890_v62 = vadd.s32 4294967256, %v2822_v1 }
 0x1a8   : > { %3944 = vst [vmem:[#allocation90_spill] sm:$0xff] %v2818_v8  ;;  %v2824_v5 = vpop.xlane.xlu2 %479  ;;  %v737_v8 = vperm.slane %v2578_v51, %v2833_v40  ;;  %v2874_v51 = vmul.f32 %v2428_v19, %v2428_v19  ;;  %v2893_v19 = vadd.s32 4294967248, %v2822_v1 }
 0x1a9   : > { %3945 = vst [vmem:[#allocation91_spill] sm:$0xff] %v2820_v56  ;;  %v681_v56 = vperm.slane %v2529_v46, %v2838_v6  ;;  %v2878_v46 = vmul.f32 %v2434_v21, %v2434_v21 }
 0x1aa   : > { %3946 = vst [vmem:[#allocation92_spill] sm:$0xff] %v2824_v5  ;;  %v679_v5 = vsel %vm678_vm0, %v677_v45, %v675_v10  ;;  %v738_v45 = vsel %vm678_vm0, %v737_v8, %v736_v47  ;;  %v741_v8 = vperm.slane %v2583_v61, %v2847_v14  ;;  %v989_v61 = vmul.f32 %v2431_v20, %v2431_v20 }
 0x1ab   : > { %v740_v47 = vsel %vm682_vm1, %v739_v49, %v738_v45  ;;  %v693_v20 = vperm.slane %v2542_v54, %v2890_v62  ;;  %v2948_v54 = vmul.f32 %v2467_v29, %v2467_v29  ;;  %v2952_v49 = vmul.f32 %v2470_v30, %v2470_v30 }
 0x1ac   : > { %1121 = vadd.xlane.f32.xlu1 %v982_v9  ;;  %1119 = vadd.xlane.f32.xlu0 %v981_v7  ;;  %v985_v7 = vmul.f32 %v2410_v15, %v2410_v15  ;;  %v685_v15 = vperm.slane %v2538_v52, %v2847_v14  ;;  %v2882_v52 = vmul.f32 %v2440_v22, %v2440_v22 }
 0x1ad   : > { %1123 = vadd.xlane.f32.xlu2 %v983_v11  ;;  %v986_v11 = vmul.f32 %v2419_v17, %v2419_v17  ;;  %v683_v17 = vsel %vm682_vm1, %v681_v56, %v679_v5  ;;  %v2887_v56 = vmul.f32 %v2443_v23, %v2443_v23  ;;  %v988_v23 = vmul.f32 %v2422_v18, %v2422_v18 }
 0x1ae   : > { %v687_v22 = vsel %vm686_vm2, %v685_v15, %v683_v17  ;;  %v2919_v15 = vmul.f32 %v2452_v25, %v2452_v25  ;;  %v2923_v18 = vmul.f32 %v2455_v26, %v2455_v26  ;;  %v2937_v25 = vadd.s32 4294967240, %v2822_v1 }
 0x1af   : > { %v2840_v12 = vpop.xlane.xlu1 %483  ;;  %v2842_v3 = vpop.xlane.xlu0 %481  ;;  %v743_v26 = vperm.slane %v2587_v63, %v2867_v13  ;;  %v742_v17 = vsel %vm686_vm2, %v741_v8, %v740_v47  ;;  %v2956_v63 = vmul.f32 %v2476_v31, %v2476_v31  ;;  %v767_v29 = vperm.slane %v2623_v0, %v2822_v1 }
 0x1b0   : > { %v2849_v9 = vpop.xlane.xlu2 %485  ;;  %v768_v45 = vperm.slane %v2630_v37, %v2833_v40  ;;  %v701_v31 = vperm.slane %v2547_v58, %v2937_v25  ;;  %v747_v8 = vperm.slane %v2592_v44, %v2893_v19  ;;  %v2980_v0 = vmul.f32 %v2479_v32, %v2479_v32 }
 0x1b1   : > { %v2988_v58 = vmul.f32 %v2482_v33, %v2482_v33  ;;  %v2992_v44 = vmul.f32 %v2488_v34, %v2488_v34  ;;  %v770_v32 = vperm.slane %v2628_v57, %v2838_v6  ;;  %v3951_v34 = vld [vmem:[#allocation24_spill] sm:$0xff] }
 0x1b2   : > { %v769_v33 = vsel %vm678_vm0, %v768_v45, %v767_v29  ;;  %v3952_v57 = vld [vmem:[#allocation32_spill] sm:$0xff]  ;;  %v3956_v29 = vld [vmem:[#allocation39_spill] sm:$0xff] }
 0x1b3   : > { %3949 = vst [vmem:[#allocation95_spill] sm:$0xff] %v2992_v44  ;;  %v772_v45 = vperm.slane %v3956_v29, %v2847_v14 }
 0x1b4   : > { %1127 = vadd.xlane.f32.xlu1 %v985_v7  ;;  %1125 = vadd.xlane.f32.xlu0 %v984_v53  ;;  %v987_v7 = vmul.f32 %v2416_v16, %v2416_v16  ;;  %v2910_v53 = vmul.f32 %v2446_v24, %v2446_v24  ;;  %v2927_v16 = vmul.f32 %v2458_v27, %v2458_v27 }
 0x1b5   : > { %1129 = vadd.xlane.f32.xlu2 %v986_v11  ;;  %v689_v11 = vperm.slane %v2533_v48, %v2867_v13  ;;  %v2931_v24 = vmul.f32 %v2464_v28, %v2464_v28  ;;  %v697_v27 = vperm.slane %v2549_v59, %v2893_v19  ;;  %v745_v28 = vperm.slane %v2594_v42, %v2890_v62 }
 0x1b6   : > { %v2959_v59 = vadd.s32 4294967232, %v2822_v1  ;;  %v2962_v42 = vadd.s32 4294967224, %v2822_v1 }
 0x1b7   : > { %v2895_v5 = vpop.xlane.xlu1 %489  ;;  %v2897_v21 = vpop.xlane.xlu0 %487  ;;  %v691_v48 = vsel %vm690_vm3, %v689_v11, %v687_v22  ;;  %v744_v22 = vsel %vm690_vm3, %v743_v26, %v742_v17 }
 0x1b8   : > { %v2902_v10 = vpop.xlane.xlu2 %491  ;;  %v695_v30 = vsel %vm694_vm4, %v693_v20, %v691_v48  ;;  %v746_v11 = vsel %vm694_vm4, %v745_v28, %v744_v22  ;;  %v2999_v48 = vadd.s32 4294967216, %v2822_v1  ;;  %v3950_v20 = vld [vmem:[#allocation30_spill] sm:$0xff]  ;;  %v709_v17 = vperm.slane %v3951_v34, %v2962_v42 }
 0x1b9   : > { %v699_v37 = vsel %vm3851_vm5, %v697_v27, %v695_v30  ;;  %v749_v26 = vperm.slane %v3950_v20, %v2937_v25  ;;  %v748_v28 = vsel %vm3851_vm5, %v747_v8, %v746_v11  ;;  %v751_v30 = vperm.slane %v3952_v57, %v2959_v59  ;;  %v3953_v22 = vld [vmem:[#allocation14_spill] sm:$0xff]  ;;  %3955 = vst [vmem:[#allocation30_spill] sm:$0xff] %v3016_v4 }
 0x1ba   : > { %v703_v27 = vsel %vm702_vm6, %v701_v31, %v699_v37  ;;  %v3957_v31 = vld [vmem:[#allocation16_spill] sm:$0xff]  ;;  %v3027_v37 = vadd.s32 4294967208, %v2822_v1  ;;  %v771_v11 = vsel %vm682_vm1, %v770_v32, %v769_v33  ;;  %v774_v20 = vperm.slane %v3959_v41, %v2867_v13  ;;  %v4011_v4 = vld [vmem:[#allocation58_spill] sm:$0xff] }
 0x1bb   : > { %v3024_v8 = vmul.f32 %v3957_v31, %v3957_v31  ;;  %v3962_v31 = vld [vmem:[#allocation17_spill] sm:$0xff] }
 0x1bc   : > { %1133 = vadd.xlane.f32.xlu1 %v988_v23  ;;  %1131 = vadd.xlane.f32.xlu0 %v987_v7 }
 0x1bd   : > { %1135 = vadd.xlane.f32.xlu2 %v989_v61  ;;  %v705_v61 = vperm.slane %v2551_v60, %v2959_v59  ;;  %v3012_v60 = vmul.f32 %v3953_v22, %v3953_v22  ;;  %3958 = vst [vmem:[#allocation24_spill] sm:$0xff] %v3024_v8  ;;  %v3961_v22 = vld [vmem:[#allocation31_spill] sm:$0xff]  ;;  %v3041_v8 = vmul.f32 %v3962_v31, %v3962_v31 }
 0x1be   : > { %v753_v29 = vperm.slane %v3961_v22, %v2962_v42 }
 0x1bf   : > { %v2974_v23 = vpop.xlane.xlu1 %495  ;;  %v2976_v7 = vpop.xlane.xlu0 %493  ;;  %v707_v34 = vsel %vm706_vm7, %v705_v61, %v703_v27  ;;  %3963 = vst [vmem:[#allocation32_spill] sm:$0xff] %v3041_v8  ;;  %v3966_v27 = vld [vmem:[#allocation18_spill] sm:$0xff] }
 0x1c0   : > { %3947 = vst [vmem:[#allocation93_spill] sm:$0xff] %v2974_v23  ;;  %v2984_v47 = vpop.xlane.xlu2 %497  ;;  %v711_v32 = vsel %vm3852_vm8, %v709_v17, %v707_v34  ;;  %v3051_v41 = vmul.f32 %v3966_v27, %v3966_v27 }
 0x1c1   : > { %3948 = vst [vmem:[#allocation94_spill] sm:$0xff] %v2984_v47 }
 0x1c2   : > { %3967 = vst [vmem:[#allocation39_spill] sm:$0xff] %v3051_v41 }
 0x1c4   : > { %1139 = vadd.xlane.f32.xlu1 %v2878_v46  ;;  %1137 = vadd.xlane.f32.xlu0 %v2874_v51  ;;  %v3960_v46 = vld [vmem:[#allocation23_spill] sm:$0xff]  ;;  %v750_v51 = vsel %vm702_vm6, %v749_v26, %v748_v28  ;;  %v3054_v26 = vadd.s32 4294967200, %v2822_v1  ;;  %v773_v28 = vsel %vm686_vm2, %v772_v45, %v771_v11 }
 0x1c5   : > { %1141 = vadd.xlane.f32.xlu2 %v2887_v56  ;;  %v713_v57 = vperm.slane %v3960_v46, %v2999_v48  ;;  %v752_v33 = vsel %vm706_vm7, %v751_v30, %v750_v51  ;;  %v3968_v46 = vld [vmem:[#allocation40_spill] sm:$0xff]  ;;  %v3970_v30 = vld [vmem:[#allocation25_spill] sm:$0xff]  ;;  %v775_v27 = vsel %vm690_vm3, %v774_v20, %v773_v28  ;;  %v3972_v11 = vld [vmem:[#allocation35_spill] sm:$0xff] }
 0x1c6   : > { %v776_v22 = vperm.slane %v3968_v46, %v2890_v62  ;;  %v717_v34 = vperm.slane %v3970_v30, %v3027_v37  ;;  %v3971_v51 = vld [vmem:[#allocation33_spill] sm:$0xff]  ;;  %v754_v45 = vsel %vm3852_vm8, %v753_v29, %v752_v33  ;;  %v757_v46 = vperm.slane %v3972_v11, %v3027_v37  ;;  %v3975_v30 = vld [vmem:[#allocation42_spill] sm:$0xff]  ;;  %v3978_v28 = vld [vmem:[#allocation27_spill] sm:$0xff] }
 0x1c7   : > { %v3045_v56 = vpop.xlane.xlu1 %501  ;;  %v3047_v61 = vpop.xlane.xlu0 %499  ;;  %v755_v31 = vperm.slane %v3971_v51, %v2999_v48  ;;  %v715_v41 = vsel %vm3854_vm9, %v713_v57, %v711_v32  ;;  %v778_v8 = vperm.slane %v3975_v30, %v2893_v19  ;;  %v3976_v51 = vld [vmem:[#allocation52_spill] sm:$0xff]  ;;  %v3977_v57 = vld [vmem:[#allocation53_spill] sm:$0xff]  ;;  %v721_v47 = vperm.slane %v3978_v28, %v3054_v26 }
 0x1c8   : > { %3964 = vst [vmem:[#allocation14_spill] sm:$0xff] %v3045_v56  ;;  %v3059_v17 = vpop.xlane.xlu2 %503  ;;  %v3068_v56 = vadd.s32 4294967192, %v2822_v1  ;;  %v799_v20 = vperm.slane %v3976_v51, %v2833_v40  ;;  %v798_v32 = vperm.slane %v3977_v57, %v2822_v1  ;;  %v777_v29 = vsel %vm694_vm4, %v776_v22, %v775_v27  ;;  %v3979_v33 = vld [vmem:[#allocation44_spill] sm:$0xff]  ;;  %v3980_v57 = vld [vmem:[#allocation26_spill] sm:$0xff] }
 0x1c9   : > { %3965 = vst [vmem:[#allocation15_spill] sm:$0xff] %v3047_v61  ;;  %v780_v11 = vperm.slane %v3979_v33, %v2937_v25  ;;  %v3092_v30 = vadd.s32 4294967184, %v2822_v1  ;;  %v756_v51 = vsel %vm3854_vm9, %v755_v31, %v754_v45  ;;  %v3981_v27 = vld [vmem:[#allocation34_spill] sm:$0xff] }
 0x1ca   : > { %3969 = vst [vmem:[#allocation16_spill] sm:$0xff] %v3059_v17  ;;  %v3973_v17 = vld [vmem:[#allocation19_spill] sm:$0xff]  ;;  %v725_v22 = vperm.slane %v3980_v57, %v3068_v56  ;;  %v759_v28 = vperm.slane %v3981_v27, %v3054_v26  ;;  %v800_v31 = vsel %vm678_vm0, %v799_v20, %v798_v32  ;;  %v3987_v27 = vld [vmem:[#allocation20_spill] sm:$0xff] }
 0x1cb   : > { %v3075_v61 = vmul.f32 %v3973_v17, %v3973_v17  ;;  %v719_v17 = vsel %vm3853_vm10, %v717_v34, %v715_v41  ;;  %v779_v41 = vsel %vm3851_vm5, %v778_v8, %v777_v29  ;;  %v3983_v34 = vld [vmem:[#allocation43_spill] sm:$0xff]  ;;  %v3992_v32 = vld [vmem:[#allocation28_spill] sm:$0xff] }
 0x1cc   : > { %1145 = vadd.xlane.f32.xlu1 %v2910_v53  ;;  %1143 = vadd.xlane.f32.xlu0 %v2882_v52  ;;  %v758_v53 = vsel %vm3853_vm10, %v757_v46, %v756_v51  ;;  %v3982_v52 = vld [vmem:[#allocation54_spill] sm:$0xff]  ;;  %v3115_v46 = vmul.f32 %v3987_v27, %v3987_v27  ;;  %v723_v51 = vsel %vm722_vm11, %v721_v47, %v719_v17  ;;  %v3993_v27 = vld [vmem:[#allocation36_spill] sm:$0xff]  ;;  %v3994_v17 = vld [vmem:[#allocation45_spill] sm:$0xff] }
 0x1cd   : > { %3974 = vst [vmem:[#allocation41_spill] sm:$0xff] %v3075_v61  ;;  %1147 = vadd.xlane.f32.xlu2 %v2923_v18  ;;  %v801_v33 = vperm.slane %v3982_v52, %v2838_v6  ;;  %v782_v61 = vperm.slane %v3983_v34, %v2959_v59  ;;  %v3984_v18 = vld [vmem:[#allocation56_spill] sm:$0xff]  ;;  %v781_v8 = vsel %vm702_vm6, %v780_v11, %v779_v41  ;;  %v3990_v52 = vld [vmem:[#allocation21_spill] sm:$0xff] }
 0x1ce   : > { %v803_v45 = vperm.slane %v3984_v18, %v2847_v14  ;;  %3988 = vst [vmem:[#allocation17_spill] sm:$0xff] %v3115_v46  ;;  %v3123_v20 = vmul.f32 %v3990_v52, %v3990_v52  ;;  %v729_v34 = vperm.slane %v3992_v32, %v3092_v30  ;;  %v3128_v18 = vadd.s32 4294967176, %v2822_v1  ;;  %v3996_v46 = vld [vmem:[#allocation47_spill] sm:$0xff] }
 0x1cf   : > { %v3109_v38 = vpop.xlane.xlu1 %507  ;;  %v3111_v57 = vpop.xlane.xlu0 %505  ;;  %v760_v47 = vsel %vm722_vm11, %v759_v28, %v758_v53  ;;  %v784_v11 = vperm.slane %v3994_v17, %v2962_v42  ;;  %v802_v41 = vsel %vm682_vm1, %v801_v33, %v800_v31  ;;  %v783_v32 = vsel %vm706_vm7, %v782_v61, %v781_v8  ;;  %v3997_v28 = vld [vmem:[#allocation38_spill] sm:$0xff]  ;;  %v3999_v33 = vld [vmem:[#allocation69_spill] sm:$0xff] }
 0x1d0   : > { %3985 = vst [vmem:[#allocation23_spill] sm:$0xff] %v3109_v38  ;;  %v3119_v29 = vpop.xlane.xlu2 %509  ;;  %v761_v38 = vperm.slane %v3993_v27, %v3068_v56  ;;  %v804_v44 = vsel %vm686_vm2, %v803_v45, %v802_v41  ;;  %v763_v53 = vperm.slane %v3997_v28, %v3092_v30  ;;  %v3998_v27 = vld [vmem:[#allocation67_spill] sm:$0xff]  ;;  %v830_v31 = vperm.slane %v3999_v33, %v2833_v40  ;;  %v4000_v61 = vld [vmem:[#allocation29_spill] sm:$0xff]  ;;  %v4003_v28 = vld [vmem:[#allocation46_spill] sm:$0xff] }
 0x1d1   : > { %3986 = vst [vmem:[#allocation31_spill] sm:$0xff] %v3111_v57  ;;  %v786_v57 = vperm.slane %v3996_v46, %v2999_v48  ;;  %v829_v17 = vperm.slane %v3998_v27, %v2822_v1  ;;  %v4001_v45 = vld [vmem:[#allocation37_spill] sm:$0xff]  ;;  %v785_v41 = vsel %vm3852_vm8, %v784_v11, %v783_v32  ;;  %v4004_v27 = vld [vmem:[#allocation59_spill] sm:$0xff] }
 0x1d2   : > { %3989 = vst [vmem:[#allocation18_spill] sm:$0xff] %v3119_v29  ;;  %v3995_v29 = vld [vmem:[#allocation55_spill] sm:$0xff]  ;;  %v762_v46 = vsel %vm726_vm12, %v761_v38, %v760_v47  ;;  %v4002_v8 = vld [vmem:[#allocation57_spill] sm:$0xff]  ;;  %v809_v33 = vperm.slane %v4004_v27, %v2893_v19 }
 0x1d3   : > { %3991 = vst [vmem:[#allocation40_spill] sm:$0xff] %v3123_v20  ;;  %v805_v52 = vperm.slane %v3995_v29, %v2867_v13  ;;  %v727_v20 = vsel %vm726_vm12, %v725_v22, %v723_v51  ;;  %v733_v22 = vperm.slane %v4000_v61, %v3128_v18  ;;  %v765_v51 = vperm.slane %v4001_v45, %v3128_v18  ;;  %v4005_v47 = vld [vmem:[#allocation71_spill] sm:$0xff]  ;;  %v4006_v45 = vld [vmem:[#allocation84_spill] sm:$0xff] }
 0x1d4   : > { %1151 = vadd.xlane.f32.xlu1 %v2927_v16  ;;  %1149 = vadd.xlane.f32.xlu0 %v2919_v15  ;;  %v807_v29 = vperm.slane %v4002_v8, %v2890_v62  ;;  %v788_v16 = vperm.slane %v4003_v28, %v3027_v37  ;;  %v787_v38 = vsel %vm3854_vm9, %v786_v57, %v785_v41  ;;  %v4008_v28 = vld [vmem:[#allocation22_spill] sm:$0xff] }
 0x1d5   : > { %1153 = vadd.xlane.f32.xlu2 %v2948_v54  ;;  %v806_v15 = vsel %vm690_vm3, %v805_v52, %v804_v44  ;;  %v832_v61 = vperm.slane %v4005_v47, %v2838_v6  ;;  %v860_v8 = vperm.slane %v4006_v45, %v2822_v1  ;;  %v861_v54 = vperm.slane %v2774_v43, %v2833_v40  ;;  %v4010_v47 = vld [vmem:[#allocation48_spill] sm:$0xff] }
 0x1d6   : > { %v3176_v44 = vmul.f32 %v4008_v28, %v4008_v28  ;;  %v764_v52 = vsel %vm730_vm13, %v763_v53, %v762_v46  ;;  %v831_v57 = vsel %vm678_vm0, %v830_v31, %v829_v17  ;;  %v731_v27 = vsel %vm730_vm13, %v729_v34, %v727_v20  ;;  %v4013_v46 = vld [vmem:[#allocation60_spill] sm:$0xff] }
 0x1d7   : > { %v514_v11 = vpop.xlane.xlu1 %513  ;;  %v3172_v32 = vpop.xlane.xlu0 %511  ;;  %v790_v45 = vperm.slane %v4010_v47, %v3054_v26  ;;  %v808_v43 = vsel %vm694_vm4, %v807_v29, %v806_v15  ;;  %v789_v23 = vsel %vm3853_vm10, %v788_v16, %v787_v38  ;;  %v863_v17 = vperm.slane %v2772_v36, %v2838_v6  ;;  %v4015_v38 = vld [vmem:[#allocation72_spill] sm:$0xff]  ;;  %v4018_v47 = vld [vmem:[#allocation74_spill] sm:$0xff] }
 0x1d8   : > { %4007 = vst [vmem:[#allocation25_spill] sm:$0xff] %v3172_v32  ;;  %v516_v41 = vpop.xlane.xlu2 %515  ;;  %v811_v32 = vperm.slane %v4011_v4, %v2937_v25  ;;  %v810_v28 = vsel %vm3851_vm5, %v809_v33, %v808_v43  ;;  %v3193_v20 = vsel %vm734_vm14, %v733_v22, %v731_v27  ;;  %v3196_v34 = vsel %vm734_vm14, %v765_v51, %v764_v52  ;;  %v4014_v51 = vld [vmem:[#allocation62_spill] sm:$0xff] }
 0x1d9   : > { %4009 = vst [vmem:[#allocation33_spill] sm:$0xff] %v3176_v44  ;;  %v4012_v44 = vld [vmem:[#allocation70_spill] sm:$0xff]  ;;  %v833_v31 = vsel %vm682_vm1, %v832_v61, %v831_v57  ;;  %v862_v4 = vsel %vm678_vm0, %v861_v54, %v860_v8  ;;  %v813_v29 = vperm.slane %v4013_v46, %v2959_v59  ;;  %v892_v16 = vperm.slane %v2840_v12, %v2833_v40  ;;  %v4016_v12 = vld [vmem:[#allocation49_spill] sm:$0xff] }
 0x1da   : > { %v834_v53 = vperm.slane %v4012_v44, %v2847_v14  ;;  %v891_v15 = vperm.slane %v2842_v3, %v2822_v1  ;;  %v791_v36 = vsel %vm722_vm11, %v790_v45, %v789_v23  ;;  %v812_v22 = vsel %vm702_vm6, %v811_v32, %v810_v28 }
 0x1db   : > { %v815_v33 = vperm.slane %v4014_v51, %v2962_v42  ;;  %v836_v61 = vperm.slane %v4015_v38, %v2867_v13  ;;  %v794_v8 = vperm.slane %v4016_v12, %v3092_v30  ;;  %v867_v54 = vperm.slane %v2784_v39, %v2867_v13  ;;  %v4022_v38 = vld [vmem:[#allocation63_spill] sm:$0xff] }
 0x1dc   : > { %1157 = vadd.xlane.f32.xlu1 %v2952_v49  ;;  %1155 = vadd.xlane.f32.xlu0 %v2931_v24  ;;  %v835_v3 = vsel %vm686_vm2, %v834_v53, %v833_v31  ;;  %v864_v49 = vsel %vm682_vm1, %v863_v17, %v862_v4  ;;  %v4017_v24 = vld [vmem:[#allocation85_spill] sm:$0xff]  ;;  %v894_v32 = vperm.slane %v2849_v9, %v2838_v6  ;;  %v4019_v53 = vld [vmem:[#allocation50_spill] sm:$0xff] }
 0x1dd   : > { %1159 = vadd.xlane.f32.xlu2 %v2980_v0  ;;  %v865_v23 = vperm.slane %v4017_v24, %v2847_v14  ;;  %v922_v44 = vperm.slane %v514_v11, %v2822_v1  ;;  %v923_v0 = vperm.slane %v516_v41, %v2833_v40  ;;  %v814_v27 = vsel %vm706_vm7, %v813_v29, %v812_v22  ;;  %v4020_v11 = vld [vmem:[#allocation61_spill] sm:$0xff]  ;;  %v4023_v24 = vld [vmem:[#allocation75_spill] sm:$0xff] }
 0x1de   : > { %v838_v45 = vperm.slane %v4018_v47, %v2890_v62  ;;  %v893_v43 = vsel %vm678_vm0, %v892_v16, %v891_v15  ;;  %v896_v28 = vperm.slane %v2897_v21, %v2847_v14  ;;  %v792_v9 = vperm.slane %v4019_v53, %v3068_v56  ;;  %v4021_v4 = vld [vmem:[#allocation73_spill] sm:$0xff] }
 0x1df   : > { %v520_v52 = vpop.xlane.xlu1 %519  ;;  %v518_v57 = vpop.xlane.xlu0 %517  ;;  %v817_v17 = vperm.slane %v4020_v11, %v2999_v48  ;;  %v816_v41 = vsel %vm3852_vm8, %v815_v33, %v814_v27  ;;  %v837_v31 = vsel %vm690_vm3, %v836_v61, %v835_v3  ;;  %v840_v46 = vperm.slane %v4021_v4, %v2893_v19  ;;  %v4026_v4 = vld [vmem:[#allocation93_spill] sm:$0xff] }
 0x1e0   : > { %v522_v39 = vpop.xlane.xlu2 %521  ;;  %v866_v29 = vsel %vm686_vm2, %v865_v23, %v864_v49  ;;  %v869_v16 = vperm.slane %v2782_v35, %v2890_v62  ;;  %v925_v21 = vperm.slane %v518_v57, %v2838_v6  ;;  %v895_v22 = vsel %vm682_vm1, %v894_v32, %v893_v43  ;;  %v4024_v57 = vld [vmem:[#allocation77_spill] sm:$0xff] }
 0x1e1   : > { %v868_v15 = vsel %vm690_vm3, %v867_v54, %v866_v29  ;;  %v898_v51 = vperm.slane %v2895_v5, %v2867_v13  ;;  %v924_v33 = vsel %vm678_vm0, %v923_v0, %v922_v44  ;;  %v819_v61 = vperm.slane %v4022_v38, %v3027_v37 }
 0x1e2   : > { %v839_v3 = vsel %vm694_vm4, %v838_v45, %v837_v31  ;;  %v897_v49 = vsel %vm686_vm2, %v896_v28, %v895_v22  ;;  %v818_v35 = vsel %vm3854_vm9, %v817_v17, %v816_v41  ;;  %v842_v23 = vperm.slane %v4023_v24, %v2937_v25  ;;  %v4029_v22 = vld [vmem:[#allocation86_spill] sm:$0xff] }
 0x1e3   : > { %v871_v5 = vperm.slane %v2786_v50, %v2893_v19  ;;  %v927_v54 = vperm.slane %v520_v52, %v2847_v14  ;;  %v870_v32 = vsel %vm694_vm4, %v869_v16, %v868_v15  ;;  %v873_v44 = vperm.slane %v2796_v55, %v2937_v25  ;;  %v4025_v55 = vld [vmem:[#allocation51_spill] sm:$0xff]  ;;  %v4028_v16 = vld [vmem:[#allocation76_spill] sm:$0xff] }
 0x1e4   : > { %1163 = vadd.xlane.f32.xlu1 %v2988_v58  ;;  %1161 = vadd.xlane.f32.xlu0 %v2956_v63  ;;  %v900_v63 = vperm.slane %v2902_v10, %v2890_v62  ;;  %v926_v58 = vsel %vm682_vm1, %v925_v21, %v924_v33  ;;  %v841_v0 = vsel %vm3851_vm5, %v840_v46, %v839_v3  ;;  %v4031_v3 = vld [vmem:[#allocation95_spill] sm:$0xff] }
 0x1e5   : > { %1165 = vadd.xlane.f32.xlu2 %v3012_v60  ;;  %v844_v27 = vperm.slane %v4024_v57, %v2959_v59  ;;  %v899_v50 = vsel %vm690_vm3, %v898_v51, %v897_v49  ;;  %v902_v60 = vperm.slane %v2976_v7, %v2893_v19  ;;  %v3276_v45 = vsel %vm726_vm12, %v792_v9, %v791_v36 }
 0x1e6   : > { %v796_v10 = vperm.slane %v4025_v55, %v3128_v18  ;;  %v820_v43 = vsel %vm3853_vm10, %v819_v61, %v818_v35  ;;  %v929_v28 = vperm.slane %v522_v39, %v2867_v13  ;;  %v872_v11 = vsel %vm3851_vm5, %v871_v5, %v870_v32  ;;  %v4027_v39 = vld [vmem:[#allocation65_spill] sm:$0xff]  ;;  %v4030_v61 = vld [vmem:[#allocation30_spill] sm:$0xff]  ;;  %v4032_v35 = vld [vmem:[#allocation88_spill] sm:$0xff] }
 0x1e7   : > { %v526_v52 = vpop.xlane.xlu1 %525  ;;  %v524_v47 = vpop.xlane.xlu0 %523  ;;  %v875_v17 = vperm.slane %v2794_v2, %v2959_v59  ;;  %v928_v7 = vsel %vm686_vm2, %v927_v54, %v926_v58  ;;  %v843_v36 = vsel %vm702_vm6, %v842_v23, %v841_v0  ;;  %v874_v9 = vsel %vm702_vm6, %v873_v44, %v872_v11  ;;  %v4033_v23 = vld [vmem:[#allocation94_spill] sm:$0xff]  ;;  %v4034_v32 = vld [vmem:[#allocation32_spill] sm:$0xff] }
 0x1e8   : > { %v528_v53 = vpop.xlane.xlu2 %527  ;;  %v931_v41 = vperm.slane %v524_v47, %v2890_v62  ;;  %v901_v31 = vsel %vm694_vm4, %v900_v63, %v899_v50  ;;  %v904_v46 = vperm.slane %v4026_v4, %v2937_v25  ;;  %v821_v29 = vperm.slane %v4027_v39, %v3054_v26  ;;  %v4035_v44 = vld [vmem:[#allocation64_spill] sm:$0xff]  ;;  %v4036_v58 = vld [vmem:[#allocation78_spill] sm:$0xff] }
 0x1e9   : > { %v846_v21 = vperm.slane %v4028_v16, %v2962_v42  ;;  %v845_v2 = vsel %vm706_vm7, %v844_v27, %v843_v36  ;;  %v903_v15 = vsel %vm3851_vm5, %v902_v60, %v901_v31  ;;  %v877_v51 = vperm.slane %v4029_v22, %v2962_v42  ;;  %v4037_v27 = vld [vmem:[#allocation15_spill] sm:$0xff]  ;;  %v4038_v47 = vld [vmem:[#allocation80_spill] sm:$0xff] }
 0x1ea   : > { %v930_v33 = vsel %vm690_vm3, %v929_v28, %v928_v7  ;;  %v933_v38 = vperm.slane %v526_v52, %v2893_v19  ;;  %v876_v49 = vsel %vm706_vm7, %v875_v17, %v874_v9  ;;  %v879_v24 = vperm.slane %v4032_v35, %v2999_v48  ;;  %v4039_v36 = vld [vmem:[#allocation87_spill] sm:$0xff] }
 0x1eb   : > { %v906_v5 = vperm.slane %v4033_v23, %v2959_v59  ;;  %v932_v54 = vsel %vm694_vm4, %v931_v41, %v930_v33  ;;  %v823_v63 = vperm.slane %v4035_v44, %v3068_v56  ;;  %v848_v0 = vperm.slane %v4036_v58, %v2999_v48  ;;  %v4042_v22 = vld [vmem:[#allocation79_spill] sm:$0xff]  ;;  %v4044_v23 = vld [vmem:[#allocation16_spill] sm:$0xff] }
 0x1ec   : > { %1169 = vadd.xlane.f32.xlu1 %v4030_v61  ;;  %1167 = vadd.xlane.f32.xlu0 %v4031_v3  ;;  %v905_v57 = vsel %vm702_vm6, %v904_v46, %v903_v15  ;;  %v908_v50 = vperm.slane %v4037_v27, %v2962_v42  ;;  %v822_v60 = vsel %vm722_vm11, %v821_v29, %v820_v43  ;;  %v4040_v43 = vld [vmem:[#allocation66_spill] sm:$0xff]  ;;  %v4043_v61 = vld [vmem:[#allocation89_spill] sm:$0xff]  ;;  %v4046_v44 = vld [vmem:[#allocation24_spill] sm:$0xff] }
 0x1ed   : > { %1171 = vadd.xlane.f32.xlu2 %v4034_v32  ;;  %v847_v52 = vsel %vm3852_vm8, %v846_v21, %v845_v2  ;;  %v850_v28 = vperm.slane %v4038_v47, %v3027_v37  ;;  %v935_v11 = vperm.slane %v528_v53, %v2937_v25  ;;  %v878_v41 = vsel %vm3852_vm8, %v877_v51, %v876_v49  ;;  %v4041_v53 = vld [vmem:[#allocation14_spill] sm:$0xff]  ;;  %v4045_v32 = vld [vmem:[#allocation39_spill] sm:$0xff] }
 0x1ee   : > { %v881_v9 = vperm.slane %v4039_v36, %v3027_v37  ;;  %v934_v31 = vsel %vm3851_vm5, %v933_v38, %v932_v54  ;;  %v825_v39 = vperm.slane %v4040_v43, %v3092_v30  ;;  %v880_v29 = vsel %vm3854_vm9, %v879_v24, %v878_v41  ;;  %v4052_v36 = vld [vmem:[#allocation83_spill] sm:$0xff] }
 0x1ef   : > { %v532_v17 = vpop.xlane.xlu1 %531  ;;  %v530_v7 = vpop.xlane.xlu0 %529  ;;  %v907_v16 = vsel %vm706_vm7, %v906_v5, %v905_v57  ;;  %v910_v21 = vperm.slane %v4041_v53, %v2999_v48  ;;  %v824_v2 = vsel %vm726_vm12, %v823_v63, %v822_v60  ;;  %v849_v15 = vsel %vm3854_vm9, %v848_v0, %v847_v52  ;;  %v4047_v63 = vld [vmem:[#allocation68_spill] sm:$0xff]  ;;  %v4048_v0 = vld [vmem:[#allocation91_spill] sm:$0xff]  ;;  %v4050_v52 = vld [vmem:[#allocation17_spill] sm:$0xff] }
 0x1f0   : > { %v937_v4 = vperm.slane %v530_v7, %v2959_v59  ;;  %v534_v46 = vpop.xlane.xlu2 %533  ;;  %v852_v51 = vperm.slane %v4042_v22, %v3054_v26  ;;  %v909_v33 = vsel %vm3852_vm8, %v908_v50, %v907_v16  ;;  %v851_v38 = vsel %vm3853_vm10, %v850_v28, %v849_v15  ;;  %v4049_v50 = vld [vmem:[#allocation31_spill] sm:$0xff] }
 0x1f1   : > { %v883_v3 = vperm.slane %v4043_v61, %v3054_v26  ;;  %v936_v49 = vsel %vm702_vm6, %v935_v11, %v934_v31  ;;  %v939_v35 = vperm.slane %v532_v17, %v2962_v42  ;;  %vm955_vm5 = vcmask 1042434   ;;  %v4051_v11 = vld [vmem:[#allocation81_spill] sm:$0xff] }
 0x1f2   : > { %v882_v24 = vsel %vm3853_vm10, %v881_v9, %v880_v29  ;;  %v912_v5 = vperm.slane %v4044_v23, %v3027_v37  ;;  %v938_v54 = vsel %vm706_vm7, %v937_v4, %v936_v49  ;;  %v827_v58 = vperm.slane %v4047_v63, %v3128_v18  ;;  %v4054_v29 = vld [vmem:[#allocation23_spill] sm:$0xff]  ;;  %v4059_v63 = vld [vmem:[#allocation40_spill] sm:$0xff] }
 0x1f3   : > { %v885_v57 = vperm.slane %v4048_v0, %v3068_v56  ;;  %v911_v27 = vsel %vm3854_vm9, %v910_v21, %v909_v33  ;;  %v914_v60 = vperm.slane %v4049_v50, %v3054_v26  ;;  %v795_v47 = vsel %vm730_vm13, %v794_v8, %v3276_v45  ;;  %v4053_v8 = vld [vmem:[#allocation90_spill] sm:$0xff]  ;;  %v1980_v0 = vld [vmem:[%s2343_s17 + $0x158] sm:$0xff] }
 0x1f4   : > { %1175 = vadd.xlane.f32.xlu1 %v4045_v32  ;;  %1173 = vadd.xlane.f32.xlu0 %v4046_v44  ;;  %v826_v28 = vsel %vm730_vm13, %v825_v39, %v824_v2  ;;  %v854_v17 = vperm.slane %v4051_v11, %v3068_v56  ;;  %v941_v7 = vperm.slane %v534_v46, %v2999_v48  ;;  %v4055_v33 = vld [vmem:[#allocation82_spill] sm:$0xff]  ;;  %v4058_v32 = vld [vmem:[#allocation25_spill] sm:$0xff] }
 0x1f5   : > { %1177 = vadd.xlane.f32.xlu2 %v4050_v52  ;;  %v853_v41 = vsel %vm722_vm11, %v852_v51, %v851_v38  ;;  %v856_v9 = vperm.slane %v4052_v36, %v3092_v30  ;;  %v884_v31 = vsel %vm722_vm11, %v883_v3, %v882_v24  ;;  %v940_v4 = vsel %vm3852_vm8, %v939_v35, %v938_v54  ;;  %v4057_v35 = vld [vmem:[#allocation18_spill] sm:$0xff] }
 0x1f6   : > { %v887_v45 = vperm.slane %v4053_v8, %v3092_v30  ;;  %v913_v39 = vsel %vm3853_vm10, %v912_v5, %v911_v27  ;;  %v916_v16 = vperm.slane %v4054_v29, %v3068_v56  ;;  %v797_v21 = vsel %vm734_vm14, %v796_v10, %v795_v47  ;;  %v4056_v10 = vld [vmem:[#allocation92_spill] sm:$0xff]  ;;  %v1981_v27 = vld [vmem:[%s2343_s17 + $0x160] sm:$0xff]  ;;  %v4061_v47 = vld [vmem:[#allocation33_spill] sm:$0xff] }
 0x1f7   : > { %v538_v43 = vpop.xlane.xlu1 %537  ;;  %v536_v12 = vpop.xlane.xlu0 %535  ;;  %v828_v2 = vsel %vm734_vm14, %v827_v58, %v826_v28  ;;  %v886_v15 = vsel %vm726_vm12, %v885_v57, %v884_v31  ;;  %v915_v22 = vsel %vm722_vm11, %v914_v60, %v913_v39  ;;  %v855_v51 = vsel %vm726_vm12, %v854_v17, %v853_v41  ;;  %v4060_v58 = vld [vmem:[#allocation41_spill] sm:$0xff] }
 0x1f8   : > { %v943_v46 = vperm.slane %v536_v12, %v3027_v37  ;;  %v540_v53 = vpop.xlane.xlu2 %539  ;;  %v858_v38 = vperm.slane %v4055_v33, %v3128_v18  ;;  %v942_v61 = vsel %vm3854_vm9, %v941_v7, %v940_v4  ;;  %v945_v3 = vperm.slane %v538_v43, %v3054_v26  ;;  %v1982_v12 = vld [vmem:[%s2343_s17 + $0x168] sm:$0xff] }
 0x1f9   : > { %v857_v55 = vsel %vm730_vm13, %v856_v9, %v855_v51  ;;  %v889_v49 = vperm.slane %v4056_v10, %v3128_v18  ;;  %v918_v24 = vperm.slane %v4057_v35, %v3092_v30  ;;  %vm3856_vm8 = vcmask 1043459  }
 0x1fa   : > { %v944_v23 = vsel %vm3853_vm10, %v943_v46, %v942_v61  ;;  %v888_v5 = vsel %vm730_vm13, %v887_v45, %v886_v15  ;;  %v917_v54 = vsel %vm726_vm12, %v916_v16, %v915_v22  ;;  %v920_v44 = vperm.slane %v4058_v32, %v3128_v18  ;;  %v288_v16 = vld [vmem:[#allocation2] sm:$0xff] }
 0x1fb   : > { %v1014_v57 = vmul.f32 %v1980_v0, %v1980_v0  ;;  %v1015_v50 = vmul.f32 %v1981_v27, %v1981_v27  ;;  %v954_v60 = vsel %vm3855_vm15, %v3196_v34, %v3193_v20  ;;  %v947_v52 = vperm.slane %v540_v53, %v3068_v56  ;;  %v1986_v0 = vld [vmem:[%s2343_s17 + $0x188] sm:$0xff]  ;;  %v1987_v27 = vld [vmem:[%s2343_s17 + $0x190] sm:$0xff] }
 0x1fc   : > { %1181 = vadd.xlane.f32.xlu1 %v4059_v63  ;;  %1179 = vadd.xlane.f32.xlu0 %v4060_v58  ;;  %v956_v28 = vsel %vm955_vm5, %v797_v21, %v954_v60  ;;  %v859_v11 = vsel %vm734_vm14, %v858_v38, %v857_v55  ;;  %vm959_vm10 = vcmask 1044484   ;;  %v946_v17 = vsel %vm722_vm11, %v945_v3, %v944_v23  ;;  %v1983_v38 = vld [vmem:[%s2343_s17 + $0x170] sm:$0xff]  ;;  %v1984_v3 = vld [vmem:[%s2343_s17 + $0x178] sm:$0xff] }
 0x1fd   : > { %1183 = vadd.xlane.f32.xlu2 %v4061_v47  ;;  %v958_v7 = vsel %vm3856_vm8, %v828_v2, %v956_v28  ;;  %vm3859_vm9 = vcmask 1045509   ;;  %v890_v41 = vsel %vm734_vm14, %v889_v49, %v888_v5  ;;  %v919_v36 = vsel %vm730_vm13, %v918_v24, %v917_v54  ;;  %v1985_v24 = vld [vmem:[%s2343_s17 + $0x180] sm:$0xff]  ;;  %v1988_v28 = vld [vmem:[%s2343_s17 + $0x198] sm:$0xff] }
 0x1fe   : > { %vm3858_vm15 = vcmask 1046534   ;;  %v921_v9 = vsel %vm734_vm14, %v920_v44, %v919_v36  ;;  %v1016_v8 = vmul.f32 %v1982_v12, %v1982_v12  ;;  %v960_v45 = vsel %vm959_vm10, %v859_v11, %v958_v7 }
 0x1ff   : > { %v544_v20 = vpop.xlane.xlu1 %543  ;;  %v542_v34 = vpop.xlane.xlu0 %541  ;;  %v948_v39 = vsel %vm726_vm12, %v947_v52, %v946_v17  ;;  %vm3857_vm8 = vcmask 1047559   ;;  %v962_v29 = vsel %vm3859_vm9, %v890_v41, %v960_v45  ;;  %v1017_v61 = vmul.f32 %v1983_v38, %v1983_v38 }
 0x200   : > { %v951_v31 = vperm.slane %v544_v20, %v3128_v18  ;;  %v949_v4 = vperm.slane %v542_v34, %v3092_v30  ;;  %v1100_v43 = vpop.xlane.xlu2 %1099  ;;  %v964_v53 = vsel %vm3858_vm15, %v921_v9, %v962_v29  ;;  %v1018_v55 = vmul.f32 %v1984_v3, %v1984_v3  ;;  %v1989_v9 = vld [vmem:[%s2343_s17 + $0x1a0] sm:$0xff] }
 0x201   : > { %v1483_v22 = vperm.slane %v1100_v43, %v2822_v1  ;;  %v1019_v23 = vmul.f32 %v1985_v24, %v1985_v24  ;;  %v1022_v11 = vmul.f32 %v1988_v28, %v1988_v28  ;;  %vm4065_vm15 = vcmask 786112  }
 0x202   : > { %v950_v46 = vsel %vm730_vm13, %v949_v4, %v948_v39  ;;  %v1990_v4 = vld [vmem:[%s2343_s17 + $0x1a8] sm:$0xff]  ;;  %v1991_v39 = vld [vmem:[%s2343_s17 + $0x1b0] sm:$0xff]  ;;  %vm4069_vm9 = vcmask 786112  }
 0x203   : > { %v952_v21 = vsel %vm734_vm14, %v951_v31, %v950_v46  ;;  %v1023_v31 = vmul.f32 %v1989_v9, %v1989_v9  ;;  %v1024_v43 = vmul.f32 %v1990_v4, %v1990_v4  ;;  %v1025_v29 = vmul.f32 %v1991_v39, %v1991_v39 }
 0x204   : > { %v966_v2 = vsel %vm3857_vm8, %v952_v21, %v964_v53  ;;  %1187 = vadd.xlane.f32.xlu1 %v1015_v50  ;;  %1185 = vadd.xlane.f32.xlu0 %v1014_v57  ;;  %v1020_v57 = vmul.f32 %v1986_v0, %v1986_v0  ;;  %v1021_v50 = vmul.f32 %v1987_v27, %v1987_v27  ;;  %vm4062_vm8 = vcmask 458112  }
 0x205   : > { %v968_v15 = vadd.f32 %v966_v2, %v288_v16  ;;  %1189 = vadd.xlane.f32.xlu2 %v1016_v8 }
 0x207   : > { %969 = vst [vmem:[#allocation2] sm:$0xff] %v968_v15  ;;  %v1104_v51 = vpop.xlane.xlu1 %1103  ;;  %v1102_v33 = vpop.xlane.xlu0 %1101 }
 0x208   : > { %v1486_v10 = vperm.slane %v1104_v51, %v2838_v6  ;;  %v1484_v49 = vperm.slane %v1102_v33, %v2833_v40  ;;  %v1106_v35 = vpop.xlane.xlu2 %1105  ;;  %v1993_v33 = vld [vmem:[%s2343_s17 + $0x1c0] sm:$0xff] }
 0x209   : > { %v1488_v5 = vperm.slane %v1106_v35, %v2847_v14  ;;  %v1027_v38 = vmul.f32 %v1993_v33, %v1993_v33 }
 0x20a   : > { %v1485_v54 = vsel %vm678_vm0, %v1484_v49, %v1483_v22  ;;  %v1992_v22 = vld [vmem:[%s2343_s17 + $0x1b8] sm:$0xff] }
 0x20b   : > { %v1487_v32 = vsel %vm682_vm1, %v1486_v10, %v1485_v54  ;;  %v1026_v51 = vmul.f32 %v1992_v22, %v1992_v22  ;;  %v1994_v10 = vld [vmem:[%s2343_s17 + $0x1c8] sm:$0xff] }
 0x20c   : > { %v1489_v44 = vsel %vm686_vm2, %v1488_v5, %v1487_v32  ;;  %1193 = vadd.xlane.f32.xlu1 %v1018_v55  ;;  %1191 = vadd.xlane.f32.xlu0 %v1017_v61  ;;  %v1028_v49 = vmul.f32 %v1994_v10, %v1994_v10 }
 0x20d   : > { %1195 = vadd.xlane.f32.xlu2 %v1019_v23 }
 0x20f   : > { %v1110_v63 = vpop.xlane.xlu1 %1109  ;;  %v1108_v58 = vpop.xlane.xlu0 %1107 }
 0x210   : > { %v1492_v60 = vperm.slane %v1110_v63, %v2890_v62  ;;  %v1490_v52 = vperm.slane %v1108_v58, %v2867_v13  ;;  %v1112_v47 = vpop.xlane.xlu2 %1111  ;;  %v1996_v58 = vld [vmem:[%s2343_s17 + $0x1d8] sm:$0xff] }
 0x211   : > { %v1494_v17 = vperm.slane %v1112_v47, %v2893_v19  ;;  %v1030_v0 = vmul.f32 %v1996_v58, %v1996_v58 }
 0x212   : > { %v1491_v7 = vsel %vm690_vm3, %v1490_v52, %v1489_v44  ;;  %v1995_v44 = vld [vmem:[%s2343_s17 + $0x1d0] sm:$0xff] }
 0x213   : > { %v1493_v41 = vsel %vm694_vm4, %v1492_v60, %v1491_v7  ;;  %v1029_v63 = vmul.f32 %v1995_v44, %v1995_v44  ;;  %v1997_v60 = vld [vmem:[%s2343_s17 + $0x1e0] sm:$0xff] }
 0x214   : > { %v1495_v36 = vsel %vm4062_vm8, %v1494_v17, %v1493_v41  ;;  %1199 = vadd.xlane.f32.xlu1 %v1021_v50  ;;  %1197 = vadd.xlane.f32.xlu0 %v1020_v57  ;;  %vm4063_vm8 = vcmask 654912   ;;  %v1031_v52 = vmul.f32 %v1997_v60, %v1997_v60 }
 0x215   : > { %1201 = vadd.xlane.f32.xlu2 %v1022_v11 }
 0x217   : > { %v1116_v20 = vpop.xlane.xlu1 %1115  ;;  %v1114_v34 = vpop.xlane.xlu0 %1113 }
 0x218   : > { %v1498_v12 = vperm.slane %v1116_v20, %v2959_v59  ;;  %v1496_v8 = vperm.slane %v1114_v34, %v2937_v25  ;;  %v1118_v45 = vpop.xlane.xlu2 %1117  ;;  %v1999_v34 = vld [vmem:[%s2343_s17 + $0x1f0] sm:$0xff] }
 0x219   : > { %v1500_v16 = vperm.slane %v1118_v45, %v2962_v42  ;;  %v1033_v9 = vmul.f32 %v1999_v34, %v1999_v34 }
 0x21a   : > { %v1497_v46 = vsel %vm702_vm6, %v1496_v8, %v1495_v36  ;;  %v1998_v36 = vld [vmem:[%s2343_s17 + $0x1e8] sm:$0xff] }
 0x21b   : > { %v1499_v53 = vsel %vm706_vm7, %v1498_v12, %v1497_v46  ;;  %v1032_v20 = vmul.f32 %v1998_v36, %v1998_v36  ;;  %v2000_v12 = vld [vmem:[%s2343_s17 + $0x1f8] sm:$0xff] }
 0x21c   : > { %v1501_v21 = vsel %vm4063_vm8, %v1500_v16, %v1499_v53  ;;  %1205 = vadd.xlane.f32.xlu1 %v1024_v43  ;;  %1203 = vadd.xlane.f32.xlu0 %v1023_v31  ;;  %vm4064_vm8 = vcmask 720512   ;;  %v1034_v8 = vmul.f32 %v2000_v12, %v2000_v12  ;;  %v2001_v53 = vld [vmem:[%s2343_s17 + $0x200] sm:$0xff] }
 0x21d   : > { %1207 = vadd.xlane.f32.xlu2 %v1025_v29 }
 0x21f   : > { %v1122_v2 = vpop.xlane.xlu1 %1121  ;;  %v1120_v15 = vpop.xlane.xlu0 %1119 }
 0x220   : > { %v1504_v61 = vperm.slane %v1122_v2, %v3027_v37  ;;  %v1502_v3 = vperm.slane %v1120_v15, %v2999_v48  ;;  %v1124_v55 = vpop.xlane.xlu2 %1123  ;;  %v2002_v2 = vld [vmem:[%s2343_s17 + $0x208] sm:$0xff] }
 0x221   : > { %v1506_v35 = vperm.slane %v1124_v55, %v3054_v26  ;;  %v1036_v15 = vmul.f32 %v2002_v2, %v2002_v2 }
 0x222   : > { %v1503_v24 = vsel %vm4064_vm8, %v1502_v3, %v1501_v21  ;;  %v1035_v21 = vmul.f32 %v2001_v53, %v2001_v53  ;;  %vm4067_vm8 = vcmask 654912   ;;  %v2011_v53 = vld [vmem:[%s2343_s17 + $0x250] sm:$0xff] }
 0x223   : > { %v1505_v23 = vsel %vm4065_vm15, %v1504_v61, %v1503_v24  ;;  %vm4066_vm15 = vcmask 458112  }
 0x224   : > { %v1507_v5 = vsel %vm722_vm11, %v1506_v35, %v1505_v23  ;;  %1211 = vadd.xlane.f32.xlu1 %v1027_v38  ;;  %1209 = vadd.xlane.f32.xlu0 %v1026_v51  ;;  %v2003_v38 = vld [vmem:[%s2343_s17 + $0x210] sm:$0xff]  ;;  %v2004_v23 = vld [vmem:[%s2343_s17 + $0x218] sm:$0xff] }
 0x225   : > { %1213 = vadd.xlane.f32.xlu2 %v1028_v49  ;;  %v1037_v61 = vmul.f32 %v2003_v38, %v2003_v38 }
 0x227   : > { %v1128_v54 = vpop.xlane.xlu1 %1127  ;;  %v1126_v32 = vpop.xlane.xlu0 %1125 }
 0x228   : > { %v1510_v57 = vperm.slane %v1128_v54, %v3092_v30  ;;  %v1508_v27 = vperm.slane %v1126_v32, %v3068_v56  ;;  %v1130_v50 = vpop.xlane.xlu2 %1129  ;;  %v2005_v54 = vld [vmem:[%s2343_s17 + $0x220] sm:$0xff] }
 0x229   : > { %v1512_v47 = vperm.slane %v1130_v50, %v3128_v18  ;;  %v1039_v32 = vmul.f32 %v2005_v54, %v2005_v54 }
 0x22a   : > { %v1509_v28 = vsel %vm726_vm12, %v1508_v27, %v1507_v5  ;;  %v1038_v5 = vmul.f32 %v2004_v23, %v2004_v23  ;;  %v2014_v23 = vld [vmem:[%s2343_s17 + $0x268] sm:$0xff] }
 0x22b   : > { %v1511_v11 = vsel %vm730_vm13, %v1510_v57, %v1509_v28 }
 0x22c   : > { %v3472_v17 = vsel %vm734_vm14, %v1512_v47, %v1511_v11  ;;  %1217 = vadd.xlane.f32.xlu1 %v1030_v0  ;;  %1215 = vadd.xlane.f32.xlu0 %v1029_v63  ;;  %v2006_v0 = vld [vmem:[%s2343_s17 + $0x228] sm:$0xff]  ;;  %v2007_v11 = vld [vmem:[%s2343_s17 + $0x230] sm:$0xff] }
 0x22d   : > { %1219 = vadd.xlane.f32.xlu2 %v1031_v52  ;;  %v1040_v57 = vmul.f32 %v2006_v0, %v2006_v0 }
 0x22f   : > { %v1134_v7 = vpop.xlane.xlu1 %1133  ;;  %v1132_v41 = vpop.xlane.xlu0 %1131 }
 0x230   : > { %v1515_v31 = vperm.slane %v1134_v7, %v2833_v40  ;;  %v1514_v4 = vperm.slane %v1132_v41, %v2822_v1  ;;  %v1136_v43 = vpop.xlane.xlu2 %1135  ;;  %v1041_v7 = vmul.f32 %v2007_v11, %v2007_v11  ;;  %v2008_v41 = vld [vmem:[%s2343_s17 + $0x238] sm:$0xff]  ;;  %v2017_v11 = vld [vmem:[%s2343_s17 + $0x280] sm:$0xff] }
 0x231   : > { %v1517_v45 = vperm.slane %v1136_v43, %v2838_v6  ;;  %v1042_v36 = vmul.f32 %v2008_v41, %v2008_v41 }
 0x232   : > { %v1516_v39 = vsel %vm678_vm0, %v1515_v31, %v1514_v4  ;;  %v2009_v31 = vld [vmem:[%s2343_s17 + $0x240] sm:$0xff] }
 0x233   : > { %v1518_v29 = vsel %vm682_vm1, %v1517_v45, %v1516_v39  ;;  %v1043_v4 = vmul.f32 %v2009_v31, %v2009_v31 }
 0x234   : > { %1223 = vadd.xlane.f32.xlu1 %v1033_v9  ;;  %1221 = vadd.xlane.f32.xlu0 %v1032_v20 }
 0x235   : > { %1225 = vadd.xlane.f32.xlu2 %v1034_v8 }
 0x237   : > { %v1140_v16 = vpop.xlane.xlu1 %1139  ;;  %v1138_v46 = vpop.xlane.xlu0 %1137 }
 0x238   : > { %v1521_v22 = vperm.slane %v1140_v16, %v2867_v13  ;;  %v1519_v51 = vperm.slane %v1138_v46, %v2847_v14  ;;  %v1142_v33 = vpop.xlane.xlu2 %1141  ;;  %v2010_v16 = vld [vmem:[%s2343_s17 + $0x248] sm:$0xff] }
 0x239   : > { %v1523_v3 = vperm.slane %v1142_v33, %v2890_v62  ;;  %v1044_v46 = vmul.f32 %v2010_v16, %v2010_v16 }
 0x23a   : > { %v1520_v55 = vsel %vm686_vm2, %v1519_v51, %v1518_v29  ;;  %v2012_v51 = vld [vmem:[%s2343_s17 + $0x258] sm:$0xff] }
 0x23b   : > { %v1522_v10 = vsel %vm690_vm3, %v1521_v22, %v1520_v55  ;;  %v1046_v33 = vmul.f32 %v2012_v51, %v2012_v51 }
 0x23c   : > { %v1524_v49 = vsel %vm694_vm4, %v1523_v3, %v1522_v10  ;;  %1229 = vadd.xlane.f32.xlu1 %v1036_v15  ;;  %1227 = vadd.xlane.f32.xlu0 %v1035_v21  ;;  %v1045_v21 = vmul.f32 %v2011_v53, %v2011_v53 }
 0x23d   : > { %1231 = vadd.xlane.f32.xlu2 %v1037_v61 }
 0x23f   : > { %v1146_v35 = vpop.xlane.xlu1 %1145  ;;  %v1144_v24 = vpop.xlane.xlu0 %1143 }
 0x240   : > { %v1527_v44 = vperm.slane %v1146_v35, %v2937_v25  ;;  %v1525_v63 = vperm.slane %v1144_v24, %v2893_v19  ;;  %v1148_v58 = vpop.xlane.xlu2 %1147  ;;  %v2013_v35 = vld [vmem:[%s2343_s17 + $0x260] sm:$0xff] }
 0x241   : > { %v1529_v27 = vperm.slane %v1148_v58, %v2959_v59  ;;  %v1047_v24 = vmul.f32 %v2013_v35, %v2013_v35 }
 0x242   : > { %v1526_v50 = vsel %vm4066_vm15, %v1525_v63, %v1524_v49  ;;  %vm4068_vm15 = vcmask 720512   ;;  %v2015_v63 = vld [vmem:[%s2343_s17 + $0x270] sm:$0xff] }
 0x243   : > { %v1528_v60 = vsel %vm702_vm6, %v1527_v44, %v1526_v50  ;;  %v1049_v58 = vmul.f32 %v2015_v63, %v2015_v63 }
 0x244   : > { %v1530_v52 = vsel %vm706_vm7, %v1529_v27, %v1528_v60  ;;  %1235 = vadd.xlane.f32.xlu1 %v1039_v32  ;;  %1233 = vadd.xlane.f32.xlu0 %v1038_v5  ;;  %v1048_v5 = vmul.f32 %v2014_v23, %v2014_v23 }
 0x245   : > { %1237 = vadd.xlane.f32.xlu2 %v1040_v57 }
 0x247   : > { %v1152_v47 = vpop.xlane.xlu1 %1151  ;;  %v1150_v28 = vpop.xlane.xlu0 %1149 }
 0x248   : > { %v1533_v20 = vperm.slane %v1152_v47, %v2999_v48  ;;  %v1531_v34 = vperm.slane %v1150_v28, %v2962_v42  ;;  %v1154_v9 = vpop.xlane.xlu2 %1153  ;;  %v2016_v47 = vld [vmem:[%s2343_s17 + $0x278] sm:$0xff] }
 0x249   : > { %v1535_v43 = vperm.slane %v1154_v9, %v3027_v37  ;;  %v1050_v28 = vmul.f32 %v2016_v47, %v2016_v47  ;;  %v2026_v47 = vld [vmem:[%s2343_s17 + $0x2c8] sm:$0xff] }
 0x24a   : > { %v1532_v12 = vsel %vm4067_vm8, %v1531_v34, %v1530_v52  ;;  %vm4071_vm8 = vcmask 458112  }
 0x24b   : > { %v1534_v8 = vsel %vm4068_vm15, %v1533_v20, %v1532_v12  ;;  %vm4072_vm15 = vcmask 654912  }
 0x24c   : > { %v1536_v45 = vsel %vm4069_vm9, %v1535_v43, %v1534_v8  ;;  %1241 = vadd.xlane.f32.xlu1 %v1042_v36  ;;  %1239 = vadd.xlane.f32.xlu0 %v1041_v7  ;;  %vm4070_vm9 = vcmask 1041409   ;;  %v1051_v7 = vmul.f32 %v2017_v11, %v2017_v11 }
 0x24d   : > { %1243 = vadd.xlane.f32.xlu2 %v1043_v4 }
 0x24f   : > { %v1158_v39 = vpop.xlane.xlu1 %1157  ;;  %v1156_v29 = vpop.xlane.xlu0 %1155 }
 0x250   : > { %v1539_v2 = vperm.slane %v1158_v39, %v3068_v56  ;;  %v1537_v15 = vperm.slane %v1156_v29, %v3054_v26  ;;  %v1160_v22 = vpop.xlane.xlu2 %1159  ;;  %v2020_v29 = vld [vmem:[%s2343_s17 + $0x298] sm:$0xff] }
 0x251   : > { %v1541_v38 = vperm.slane %v1160_v22, %v3092_v30  ;;  %v1054_v16 = vmul.f32 %v2020_v29, %v2020_v29 }
 0x252   : > { %v1538_v61 = vsel %vm722_vm11, %v1537_v15, %v1536_v45  ;;  %v2019_v45 = vld [vmem:[%s2343_s17 + $0x290] sm:$0xff] }
 0x253   : > { %v1540_v3 = vsel %vm726_vm12, %v1539_v2, %v1538_v61  ;;  %v1053_v39 = vmul.f32 %v2019_v45, %v2019_v45  ;;  %v2021_v2 = vld [vmem:[%s2343_s17 + $0x2a0] sm:$0xff] }
 0x254   : > { %v1542_v55 = vsel %vm730_vm13, %v1541_v38, %v1540_v3  ;;  %1247 = vadd.xlane.f32.xlu1 %v1045_v21  ;;  %1245 = vadd.xlane.f32.xlu0 %v1044_v46  ;;  %v1055_v15 = vmul.f32 %v2021_v2, %v2021_v2  ;;  %v2029_v45 = vld [vmem:[%s2343_s17 + $0x2e0] sm:$0xff] }
 0x255   : > { %1249 = vadd.xlane.f32.xlu2 %v1046_v33 }
 0x257   : > { %v1164_v10 = vpop.xlane.xlu1 %1163  ;;  %v1162_v49 = vpop.xlane.xlu0 %1161 }
 0x258   : > { %v1545_v54 = vperm.slane %v1164_v10, %v2822_v1  ;;  %v1543_v32 = vperm.slane %v1162_v49, %v3128_v18  ;;  %v1166_v44 = vpop.xlane.xlu2 %1165  ;;  %v2023_v49 = vld [vmem:[%s2343_s17 + $0x2b0] sm:$0xff] }
 0x259   : > { %v1546_v0 = vperm.slane %v1166_v44, %v2833_v40  ;;  %v1057_v35 = vmul.f32 %v2023_v49, %v2023_v49 }
 0x25a   : > { %v1544_v57 = vsel %vm734_vm14, %v1543_v32, %v1542_v55  ;;  %v2022_v55 = vld [vmem:[%s2343_s17 + $0x2a8] sm:$0xff] }
 0x25b   : > { %v3527_v27 = vsel %vm4070_vm9, %v1544_v57, %v3472_v17  ;;  %v1547_v50 = vsel %vm678_vm0, %v1546_v0, %v1545_v54  ;;  %v2018_v17 = vld [vmem:[%s2343_s17 + $0x288] sm:$0xff]  ;;  %v1056_v10 = vmul.f32 %v2022_v55, %v2022_v55  ;;  %v2024_v54 = vld [vmem:[%s2343_s17 + $0x2b8] sm:$0xff]  ;;  %vm4073_vm9 = vcmask 720512  }
 0x25c   : > { %1253 = vadd.xlane.f32.xlu1 %v1048_v5  ;;  %1251 = vadd.xlane.f32.xlu0 %v1047_v24  ;;  %v1052_v34 = vmul.f32 %v2018_v17, %v2018_v17  ;;  %v1058_v32 = vmul.f32 %v2024_v54, %v2024_v54  ;;  %v2032_v55 = vld [vmem:[%s2343_s17 + $0x2f8] sm:$0xff] }
 0x25d   : > { %1255 = vadd.xlane.f32.xlu2 %v1049_v58 }
 0x25f   : > { %v1170_v60 = vpop.xlane.xlu1 %1169  ;;  %v1168_v52 = vpop.xlane.xlu0 %1167 }
 0x260   : > { %v1550_v41 = vperm.slane %v1170_v60, %v2847_v14  ;;  %v1548_v36 = vperm.slane %v1168_v52, %v2838_v6  ;;  %v1172_v20 = vpop.xlane.xlu2 %1171  ;;  %v2025_v60 = vld [vmem:[%s2343_s17 + $0x2c0] sm:$0xff] }
 0x261   : > { %v1552_v9 = vperm.slane %v1172_v20, %v2867_v13  ;;  %v1059_v52 = vmul.f32 %v2025_v60, %v2025_v60 }
 0x262   : > { %v1549_v31 = vsel %vm682_vm1, %v1548_v36, %v1547_v50  ;;  %v2027_v36 = vld [vmem:[%s2343_s17 + $0x2d0] sm:$0xff] }
 0x263   : > { %v1551_v4 = vsel %vm686_vm2, %v1550_v41, %v1549_v31  ;;  %v1061_v20 = vmul.f32 %v2027_v36, %v2027_v36 }
 0x264   : > { %v1553_v43 = vsel %vm690_vm3, %v1552_v9, %v1551_v4  ;;  %1259 = vadd.xlane.f32.xlu1 %v1051_v7  ;;  %1257 = vadd.xlane.f32.xlu0 %v1050_v28  ;;  %v1060_v28 = vmul.f32 %v2026_v47, %v2026_v47 }
 0x265   : > { %1261 = vadd.xlane.f32.xlu2 %v1052_v34 }
 0x267   : > { %v1176_v12 = vpop.xlane.xlu1 %1175  ;;  %v1174_v8 = vpop.xlane.xlu0 %1173 }
 0x268   : > { %v1556_v46 = vperm.slane %v1176_v12, %v2893_v19  ;;  %v1554_v53 = vperm.slane %v1174_v8, %v2890_v62  ;;  %v1178_v21 = vpop.xlane.xlu2 %1177  ;;  %v2028_v12 = vld [vmem:[%s2343_s17 + $0x2d8] sm:$0xff] }
 0x269   : > { %v1558_v22 = vperm.slane %v1178_v21, %v2937_v25  ;;  %v1062_v8 = vmul.f32 %v2028_v12, %v2028_v12 }
 0x26a   : > { %v1555_v51 = vsel %vm694_vm4, %v1554_v53, %v1553_v43  ;;  %v2030_v53 = vld [vmem:[%s2343_s17 + $0x2e8] sm:$0xff] }
 0x26b   : > { %v1557_v33 = vsel %vm4071_vm8, %v1556_v46, %v1555_v51  ;;  %vm4074_vm8 = vcmask 786112   ;;  %v1064_v21 = vmul.f32 %v2030_v53, %v2030_v53 }
 0x26c   : > { %v1559_v38 = vsel %vm702_vm6, %v1558_v22, %v1557_v33  ;;  %1265 = vadd.xlane.f32.xlu1 %v1054_v16  ;;  %1263 = vadd.xlane.f32.xlu0 %v1053_v39  ;;  %v1063_v39 = vmul.f32 %v2029_v45, %v2029_v45 }
 0x26d   : > { %1267 = vadd.xlane.f32.xlu2 %v1055_v15 }
 0x26f   : > { %v1182_v61 = vpop.xlane.xlu1 %1181  ;;  %v1180_v3 = vpop.xlane.xlu0 %1179 }
 0x270   : > { %v1562_v24 = vperm.slane %v1182_v61, %v2962_v42  ;;  %v1560_v23 = vperm.slane %v1180_v3, %v2959_v59  ;;  %v1184_v5 = vpop.xlane.xlu2 %1183  ;;  %v2031_v61 = vld [vmem:[%s2343_s17 + $0x2f0] sm:$0xff] }
 0x271   : > { %v1564_v44 = vperm.slane %v1184_v5, %v2999_v48  ;;  %v1065_v3 = vmul.f32 %v2031_v61, %v2031_v61  ;;  %v2041_v61 = vld [vmem:[%s2343_s17 + $0x340] sm:$0xff] }
 0x272   : > { %v1561_v63 = vsel %vm706_vm7, %v1560_v23, %v1559_v38  ;;  %v2033_v23 = vld [vmem:[%s2343_s17 + $0x300] sm:$0xff] }
 0x273   : > { %v1563_v58 = vsel %vm4072_vm15, %v1562_v24, %v1561_v63  ;;  %v1067_v5 = vmul.f32 %v2033_v23, %v2033_v23 }
 0x274   : > { %v1565_v0 = vsel %vm4073_vm9, %v1564_v44, %v1563_v58  ;;  %1271 = vadd.xlane.f32.xlu1 %v1057_v35  ;;  %1269 = vadd.xlane.f32.xlu0 %v1056_v10  ;;  %v1066_v10 = vmul.f32 %v2032_v55, %v2032_v55 }
 0x275   : > { %1273 = vadd.xlane.f32.xlu2 %v1058_v32 }
 0x277   : > { %v1188_v57 = vpop.xlane.xlu1 %1187  ;;  %v1186_v50 = vpop.xlane.xlu0 %1185 }
 0x278   : > { %v1568_v11 = vperm.slane %v1188_v57, %v3054_v26  ;;  %v1566_v7 = vperm.slane %v1186_v50, %v3027_v37  ;;  %v1190_v41 = vpop.xlane.xlu2 %1189  ;;  %v2035_v50 = vld [vmem:[%s2343_s17 + $0x310] sm:$0xff] }
 0x279   : > { %v1570_v17 = vperm.slane %v1190_v41, %v3068_v56  ;;  %v1069_v60 = vmul.f32 %v2035_v50, %v2035_v50 }
 0x27a   : > { %v1567_v34 = vsel %vm4074_vm8, %v1566_v7, %v1565_v0  ;;  %v2034_v0 = vld [vmem:[%s2343_s17 + $0x308] sm:$0xff] }
 0x27b   : > { %v1569_v9 = vsel %vm722_vm11, %v1568_v11, %v1567_v34  ;;  %v1068_v57 = vmul.f32 %v2034_v0, %v2034_v0  ;;  %v2036_v11 = vld [vmem:[%s2343_s17 + $0x318] sm:$0xff] }
 0x27c   : > { %v1571_v31 = vsel %vm726_vm12, %v1570_v17, %v1569_v9  ;;  %1277 = vadd.xlane.f32.xlu1 %v1060_v28  ;;  %1275 = vadd.xlane.f32.xlu0 %v1059_v52  ;;  %v1070_v7 = vmul.f32 %v2036_v11, %v2036_v11  ;;  %v2044_v0 = vld [vmem:[%s2343_s17 + $0x358] sm:$0xff] }
 0x27d   : > { %1279 = vadd.xlane.f32.xlu2 %v1061_v20 }
 0x27f   : > { %v1194_v4 = vpop.xlane.xlu1 %1193  ;;  %v1192_v43 = vpop.xlane.xlu0 %1191 }
 0x280   : > { %v1574_v29 = vperm.slane %v1194_v4, %v3128_v18  ;;  %v1572_v16 = vperm.slane %v1192_v43, %v3092_v30  ;;  %v1196_v46 = vpop.xlane.xlu2 %1195  ;;  %v2038_v43 = vld [vmem:[%s2343_s17 + $0x328] sm:$0xff] }
 0x281   : > { %v1576_v51 = vperm.slane %v1196_v46, %v2822_v1  ;;  %v1072_v12 = vmul.f32 %v2038_v43, %v2038_v43 }
 0x282   : > { %v1573_v2 = vsel %vm730_vm13, %v1572_v16, %v1571_v31  ;;  %v2037_v31 = vld [vmem:[%s2343_s17 + $0x320] sm:$0xff] }
 0x283   : > { %v1575_v15 = vsel %vm734_vm14, %v1574_v29, %v1573_v2  ;;  %v1071_v4 = vmul.f32 %v2037_v31, %v2037_v31  ;;  %v2039_v29 = vld [vmem:[%s2343_s17 + $0x330] sm:$0xff] }
 0x284   : > { %1283 = vadd.xlane.f32.xlu1 %v1063_v39  ;;  %1281 = vadd.xlane.f32.xlu0 %v1062_v8  ;;  %v3575_v22 = vsel %vm955_vm5, %v1575_v15, %v3527_v27  ;;  %vm4075_vm5 = vcmask 458112   ;;  %v1073_v16 = vmul.f32 %v2039_v29, %v2039_v29 }
 0x285   : > { %1285 = vadd.xlane.f32.xlu2 %v1064_v21 }
 0x287   : > { %v1200_v33 = vpop.xlane.xlu1 %1199  ;;  %v1198_v38 = vpop.xlane.xlu0 %1197 }
 0x288   : > { %v1579_v49 = vperm.slane %v1200_v33, %v2838_v6  ;;  %v1577_v35 = vperm.slane %v1198_v38, %v2833_v40  ;;  %v1202_v24 = vpop.xlane.xlu2 %1201  ;;  %v2040_v33 = vld [vmem:[%s2343_s17 + $0x338] sm:$0xff] }
 0x289   : > { %v1581_v27 = vperm.slane %v1202_v24, %v2847_v14  ;;  %v1074_v38 = vmul.f32 %v2040_v33, %v2040_v33 }
 0x28a   : > { %v1578_v54 = vsel %vm678_vm0, %v1577_v35, %v1576_v51  ;;  %v2042_v35 = vld [vmem:[%s2343_s17 + $0x348] sm:$0xff] }
 0x28b   : > { %v1580_v32 = vsel %vm682_vm1, %v1579_v49, %v1578_v54  ;;  %v1076_v24 = vmul.f32 %v2042_v35, %v2042_v35 }
 0x28c   : > { %v1582_v44 = vsel %vm686_vm2, %v1581_v27, %v1580_v32  ;;  %1289 = vadd.xlane.f32.xlu1 %v1066_v10  ;;  %1287 = vadd.xlane.f32.xlu0 %v1065_v3  ;;  %v1075_v3 = vmul.f32 %v2041_v61, %v2041_v61 }
 0x28d   : > { %1291 = vadd.xlane.f32.xlu2 %v1067_v5 }
 0x28f   : > { %v1206_v63 = vpop.xlane.xlu1 %1205  ;;  %v1204_v58 = vpop.xlane.xlu0 %1203 }
 0x290   : > { %v1585_v52 = vperm.slane %v1206_v63, %v2890_v62  ;;  %v1583_v47 = vperm.slane %v1204_v58, %v2867_v13  ;;  %v1208_v28 = vpop.xlane.xlu2 %1207  ;;  %v2043_v63 = vld [vmem:[%s2343_s17 + $0x350] sm:$0xff] }
 0x291   : > { %v1587_v41 = vperm.slane %v1208_v28, %v2893_v19  ;;  %v1077_v58 = vmul.f32 %v2043_v63, %v2043_v63 }
 0x292   : > { %v1584_v36 = vsel %vm690_vm3, %v1583_v47, %v1582_v44  ;;  %v2045_v47 = vld [vmem:[%s2343_s17 + $0x380] sm:$0xff] }
 0x293   : > { %v1586_v20 = vsel %vm694_vm4, %v1585_v52, %v1584_v36  ;;  %v1083_v28 = vmul.f32 %v2045_v47, %v2045_v47 }
 0x294   : > { %v1588_v17 = vsel %vm4075_vm5, %v1587_v41, %v1586_v20  ;;  %1295 = vadd.xlane.f32.xlu1 %v1069_v60  ;;  %1293 = vadd.xlane.f32.xlu0 %v1068_v57  ;;  %v1078_v57 = vmul.f32 %v2044_v0, %v2044_v0  ;;  %vm4076_vm5 = vcmask 1043459  }
 0x295   : > { %1297 = vadd.xlane.f32.xlu2 %v1070_v7 }
 0x297   : > { %v1212_v34 = vpop.xlane.xlu1 %1211  ;;  %v1210_v9 = vpop.xlane.xlu0 %1209 }
 0x298   : > { %v1591_v8 = vperm.slane %v1212_v34, %v2959_v59  ;;  %v1589_v45 = vperm.slane %v1210_v9, %v2937_v25  ;;  %v1214_v39 = vpop.xlane.xlu2 %1213  ;;  %v2046_v9 = vld [vmem:[%s2343_s17 + $0x388] sm:$0xff] }
 0x299   : > { %v1593_v46 = vperm.slane %v1214_v39, %v2962_v42  ;;  %v1084_v31 = vmul.f32 %v2046_v9, %v2046_v9  ;;  %v2048_v39 = vld [vmem:[%s2343_s17 + $0x398] sm:$0xff] }
 0x29a   : > { %v1590_v53 = vsel %vm702_vm6, %v1589_v45, %v1588_v17  ;;  %v1086_v29 = vmul.f32 %v2048_v39, %v2048_v39 }
 0x29b   : > { %v1592_v21 = vsel %vm706_vm7, %v1591_v8, %v1590_v53 }
 0x29c   : > { %v1594_v2 = vsel %vm4072_vm15, %v1593_v46, %v1592_v21  ;;  %1301 = vadd.xlane.f32.xlu1 %v1072_v12  ;;  %1299 = vadd.xlane.f32.xlu0 %v1071_v4  ;;  %v2047_v4 = vld [vmem:[%s2343_s17 + $0x390] sm:$0xff]  ;;  %vm4077_vm15 = vcmask 458112  }
 0x29d   : > { %1303 = vadd.xlane.f32.xlu2 %v1073_v16  ;;  %v1085_v43 = vmul.f32 %v2047_v4, %v2047_v4 }
 0x29f   : > { %v1218_v15 = vpop.xlane.xlu1 %1217  ;;  %v1216_v51 = vpop.xlane.xlu0 %1215 }
 0x2a0   : > { %v1597_v55 = vperm.slane %v1218_v15, %v3027_v37  ;;  %v1595_v10 = vperm.slane %v1216_v51, %v2999_v48  ;;  %v1220_v49 = vpop.xlane.xlu2 %1219  ;;  %v2050_v51 = vld [vmem:[%s2343_s17 + $0x3a8] sm:$0xff] }
 0x2a1   : > { %v1599_v23 = vperm.slane %v1220_v49, %v3054_v26  ;;  %v1088_v33 = vmul.f32 %v2050_v51, %v2050_v51 }
 0x2a2   : > { %v1596_v5 = vsel %vm4073_vm9, %v1595_v10, %v1594_v2  ;;  %v2049_v2 = vld [vmem:[%s2343_s17 + $0x3a0] sm:$0xff]  ;;  %vm4078_vm9 = vcmask 654912  }
 0x2a3   : > { %v1598_v27 = vsel %vm4074_vm8, %v1597_v55, %v1596_v5  ;;  %v1087_v15 = vmul.f32 %v2049_v2, %v2049_v2  ;;  %v2051_v55 = vld [vmem:[%s2343_s17 + $0x3b0] sm:$0xff]  ;;  %vm4079_vm8 = vcmask 720512   ;;  %v2059_v2 = vld [vmem:[%s2343_s17 + $0x3e0] sm:$0xff] }
 0x2a4   : > { %v1600_v54 = vsel %vm722_vm11, %v1599_v23, %v1598_v27  ;;  %1307 = vadd.xlane.f32.xlu1 %v1075_v3  ;;  %1305 = vadd.xlane.f32.xlu0 %v1074_v38  ;;  %v1089_v10 = vmul.f32 %v2051_v55, %v2051_v55 }
 0x2a5   : > { %1309 = vadd.xlane.f32.xlu2 %v1076_v24 }
 0x2a7   : > { %v1224_v32 = vpop.xlane.xlu1 %1223  ;;  %v1222_v44 = vpop.xlane.xlu0 %1221 }
 0x2a8   : > { %v1603_v50 = vperm.slane %v1224_v32, %v3092_v30  ;;  %v1601_v60 = vperm.slane %v1222_v44, %v3068_v56  ;;  %v1226_v52 = vpop.xlane.xlu2 %1225  ;;  %v2053_v44 = vld [vmem:[%s2343_s17 + $0x3c0] sm:$0xff] }
 0x2a9   : > { %v1605_v11 = vperm.slane %v1226_v52, %v3128_v18  ;;  %v1091_v63 = vmul.f32 %v2053_v44, %v2053_v44 }
 0x2aa   : > { %v1602_v7 = vsel %vm726_vm12, %v1601_v60, %v1600_v54  ;;  %v2052_v54 = vld [vmem:[%s2343_s17 + $0x3b8] sm:$0xff] }
 0x2ab   : > { %v1604_v41 = vsel %vm730_vm13, %v1603_v50, %v1602_v7  ;;  %v1090_v32 = vmul.f32 %v2052_v54, %v2052_v54  ;;  %v2054_v50 = vld [vmem:[%s2343_s17 + $0x3c8] sm:$0xff] }
 0x2ac   : > { %v1606_v36 = vsel %vm734_vm14, %v1605_v11, %v1604_v41  ;;  %1313 = vadd.xlane.f32.xlu1 %v1078_v57  ;;  %1311 = vadd.xlane.f32.xlu0 %v1077_v58  ;;  %v1092_v60 = vmul.f32 %v2054_v50, %v2054_v50  ;;  %v2062_v54 = vld [vmem:[%s2343_s17 + $0x3e8] sm:$0xff] }
 0x2ad   : > { %v3625_v20 = vsel %vm4076_vm5, %v1606_v36, %v3575_v22  ;;  %1323 = vadd.xlane.f32.xlu2 %v1083_v28  ;;  %v2055_v36 = vld [vmem:[%s2343_s17 + $0x360] sm:$0xff]  ;;  %vm4080_vm5 = vcmask 786112  }
 0x2af   : > { %v1230_v17 = vpop.xlane.xlu1 %1229  ;;  %v1228_v34 = vpop.xlane.xlu0 %1227 }
 0x2b0   : > { %v1608_v12 = vperm.slane %v1230_v17, %v2833_v40  ;;  %v1607_v8 = vperm.slane %v1228_v34, %v2822_v1  ;;  %v1232_v45 = vpop.xlane.xlu2 %1231  ;;  %v1079_v17 = vmul.f32 %v2055_v36, %v2055_v36  ;;  %v2056_v34 = vld [vmem:[%s2343_s17 + $0x3d0] sm:$0xff] }
 0x2b1   : > { %v1610_v22 = vperm.slane %v1232_v45, %v2838_v6  ;;  %v1093_v9 = vmul.f32 %v2056_v34, %v2056_v34 }
 0x2b2   : > { %v1609_v16 = vsel %vm678_vm0, %v1608_v12, %v1607_v8  ;;  %v2057_v12 = vld [vmem:[%s2343_s17 + $0x3d8] sm:$0xff] }
 0x2b3   : > { %v1611_v46 = vsel %vm682_vm1, %v1610_v22, %v1609_v16  ;;  %v1094_v8 = vmul.f32 %v2057_v12, %v2057_v12 }
 0x2b4   : > { %1327 = vadd.xlane.f32.xlu1 %v1085_v43  ;;  %1325 = vadd.xlane.f32.xlu0 %v1084_v31 }
 0x2b5   : > { %1329 = vadd.xlane.f32.xlu2 %v1086_v29 }
 0x2b7   : > { %v1236_v53 = vpop.xlane.xlu1 %1235  ;;  %v1234_v21 = vpop.xlane.xlu0 %1233 }
 0x2b8   : > { %v1614_v38 = vperm.slane %v1236_v53, %v2867_v13  ;;  %v1612_v61 = vperm.slane %v1234_v21, %v2847_v14  ;;  %v1238_v3 = vpop.xlane.xlu2 %1237  ;;  %v2058_v53 = vld [vmem:[%s2343_s17 + $0x368] sm:$0xff] }
 0x2b9   : > { %v1616_v49 = vperm.slane %v1238_v3, %v2890_v62  ;;  %v1080_v21 = vmul.f32 %v2058_v53, %v2058_v53 }
 0x2ba   : > { %v1613_v35 = vsel %vm686_vm2, %v1612_v61, %v1611_v46  ;;  %v2060_v61 = vld [vmem:[%s2343_s17 + $0x370] sm:$0xff] }
 0x2bb   : > { %v1615_v24 = vsel %vm690_vm3, %v1614_v38, %v1613_v35  ;;  %v1081_v3 = vmul.f32 %v2060_v61, %v2060_v61 }
 0x2bc   : > { %v1617_v23 = vsel %vm694_vm4, %v1616_v49, %v1615_v24  ;;  %1333 = vadd.xlane.f32.xlu1 %v1088_v33  ;;  %1331 = vadd.xlane.f32.xlu0 %v1087_v15  ;;  %v1095_v15 = vmul.f32 %v2059_v2, %v2059_v2 }
 0x2bd   : > { %1335 = vadd.xlane.f32.xlu2 %v1089_v10 }
 0x2bf   : > { %v1242_v5 = vpop.xlane.xlu1 %1241  ;;  %v1240_v27 = vpop.xlane.xlu0 %1239 }
 0x2c0   : > { %v1620_v58 = vperm.slane %v1242_v5, %v2937_v25  ;;  %v1618_v0 = vperm.slane %v1240_v27, %v2893_v19  ;;  %v1244_v57 = vpop.xlane.xlu2 %1243  ;;  %v2061_v5 = vld [vmem:[%s2343_s17 + $0x378] sm:$0xff] }
 0x2c1   : > { %v1622_v52 = vperm.slane %v1244_v57, %v2959_v59  ;;  %v1082_v27 = vmul.f32 %v2061_v5, %v2061_v5 }
 0x2c2   : > { %v1619_v47 = vsel %vm4077_vm15, %v1618_v0, %v1617_v23  ;;  %v2063_v0 = vld [vmem:[%s2343_s17 + $0x3f0] sm:$0xff] }
 0x2c3   : > { %v1621_v28 = vsel %vm702_vm6, %v1620_v58, %v1619_v47  ;;  %v1097_v57 = vmul.f32 %v2063_v0, %v2063_v0 }
 0x2c4   : > { %v1623_v11 = vsel %vm706_vm7, %v1622_v52, %v1621_v28  ;;  %1339 = vadd.xlane.f32.xlu1 %v1091_v63  ;;  %1337 = vadd.xlane.f32.xlu0 %v1090_v32  ;;  %v1096_v32 = vmul.f32 %v2062_v54, %v2062_v54 }
 0x2c5   : > { %1341 = vadd.xlane.f32.xlu2 %v1092_v60 }
 0x2c7   : > { %v1248_v7 = vpop.xlane.xlu1 %1247  ;;  %v1246_v41 = vpop.xlane.xlu0 %1245 }
 0x2c8   : > { %v1626_v31 = vperm.slane %v1248_v7, %v2999_v48  ;;  %v1624_v4 = vperm.slane %v1246_v41, %v2962_v42  ;;  %v1250_v43 = vpop.xlane.xlu2 %1249  ;;  %v2064_v7 = vld [vmem:[%s2343_s17 + $0x3f8] sm:$0xff] }
 0x2c9   : > { %v1628_v45 = vperm.slane %v1250_v43, %v3027_v37  ;;  %v1098_v41 = vmul.f32 %v2064_v7, %v2064_v7 }
 0x2ca   : > { %v1625_v39 = vsel %vm4078_vm9, %v1624_v4, %v1623_v11 }
 0x2cb   : > { %v1627_v29 = vsel %vm4079_vm8, %v1626_v31, %v1625_v39 }
 0x2cc   : > { %v1629_v22 = vsel %vm4080_vm5, %v1628_v45, %v1627_v29  ;;  %1315 = vadd.xlane.f32.xlu1 %v1079_v17  ;;  %1343 = vadd.xlane.f32.xlu0 %v1093_v9 }
 0x2cd   : > { %1345 = vadd.xlane.f32.xlu2 %v1094_v8 }
 0x2cf   : > { %v1254_v16 = vpop.xlane.xlu1 %1253  ;;  %v1252_v46 = vpop.xlane.xlu0 %1251 }
 0x2d0   : > { %v1632_v51 = vperm.slane %v1254_v16, %v3068_v56  ;;  %v1630_v33 = vperm.slane %v1252_v46, %v3054_v26  ;;  %v1256_v38 = vpop.xlane.xlu2 %1255 }
 0x2d1   : > { %v1634_v55 = vperm.slane %v1256_v38, %v3092_v30 }
 0x2d2   : > { %v1631_v10 = vsel %vm722_vm11, %v1630_v33, %v1629_v22 }
 0x2d3   : > { %v1633_v49 = vsel %vm726_vm12, %v1632_v51, %v1631_v10 }
 0x2d4   : > { %v1635_v35 = vsel %vm730_vm13, %v1634_v55, %v1633_v49  ;;  %1347 = vadd.xlane.f32.xlu1 %v1095_v15  ;;  %1317 = vadd.xlane.f32.xlu0 %v1080_v21 }
 0x2d5   : > { %1319 = vadd.xlane.f32.xlu2 %v1081_v3 }
 0x2d7   : > { %v1260_v24 = vpop.xlane.xlu1 %1259  ;;  %v1258_v23 = vpop.xlane.xlu0 %1257 }
 0x2d8   : > { %v1638_v44 = vperm.slane %v1260_v24, %v2822_v1  ;;  %v1636_v63 = vperm.slane %v1258_v23, %v3128_v18  ;;  %v1262_v58 = vpop.xlane.xlu2 %1261 }
 0x2d9   : > { %v1639_v50 = vperm.slane %v1262_v58, %v2833_v40 }
 0x2da   : > { %v1637_v60 = vsel %vm734_vm14, %v1636_v63, %v1635_v35 }
 0x2db   : > { %v1734_v52 = vsel %vm959_vm10, %v1637_v60, %v3625_v20  ;;  %v1640_v47 = vsel %vm678_vm0, %v1639_v50, %v1638_v44  ;;  %vm4081_vm10 = vmmov %vm4077_vm15 }
 0x2dc   : > { %1321 = vadd.xlane.f32.xlu1 %v1082_v27  ;;  %1349 = vadd.xlane.f32.xlu0 %v1096_v32  ;;  %vm4082_vm15 = vmmov %vm4078_vm9 }
 0x2dd   : > { %1351 = vadd.xlane.f32.xlu2 %v1097_v57  ;;  %vm4083_vm9 = vmmov %vm4079_vm8 }
 0x2de   : > { %vm4084_vm8 = vmmov %vm4080_vm5  ;;  %vm4085_vm5 = vcmask 1045509  }
 0x2df   : > { %v1266_v28 = vpop.xlane.xlu1 %1265  ;;  %v1264_v11 = vpop.xlane.xlu0 %1263 }
 0x2e0   : > { %v1643_v36 = vperm.slane %v1266_v28, %v2847_v14  ;;  %v1641_v17 = vperm.slane %v1264_v11, %v2838_v6  ;;  %v1268_v34 = vpop.xlane.xlu2 %1267 }
 0x2e1   : > { %v1645_v9 = vperm.slane %v1268_v34, %v2867_v13 }
 0x2e2   : > { %v1642_v31 = vsel %vm682_vm1, %v1641_v17, %v1640_v47 }
 0x2e3   : > { %v1644_v20 = vsel %vm686_vm2, %v1643_v36, %v1642_v31 }
 0x2e4   : > { %v1646_v4 = vsel %vm690_vm3, %v1645_v9, %v1644_v20  ;;  %1353 = vadd.xlane.f32.xlu0 %v1098_v41 }
 0x2e7   : > { %v1272_v43 = vpop.xlane.xlu1 %1271  ;;  %v1270_v12 = vpop.xlane.xlu0 %1269 }
 0x2e8   : > { %v1649_v8 = vperm.slane %v1272_v43, %v2893_v19  ;;  %v1647_v45 = vperm.slane %v1270_v12, %v2890_v62  ;;  %v1274_v39 = vpop.xlane.xlu2 %1273 }
 0x2e9   : > { %v1651_v29 = vperm.slane %v1274_v39, %v2937_v25 }
 0x2ea   : > { %v1648_v22 = vsel %vm694_vm4, %v1647_v45, %v1646_v4 }
 0x2eb   : > { %v1650_v16 = vsel %vm4081_vm10, %v1649_v8, %v1648_v22 }
 0x2ec   : > { %v1652_v46 = vsel %vm702_vm6, %v1651_v29, %v1650_v16 }
 0x2ef   : > { %v1278_v53 = vpop.xlane.xlu1 %1277  ;;  %v1276_v21 = vpop.xlane.xlu0 %1275 }
 0x2f0   : > { %v1655_v2 = vperm.slane %v1278_v53, %v2962_v42  ;;  %v1653_v15 = vperm.slane %v1276_v21, %v2959_v59  ;;  %v1280_v51 = vpop.xlane.xlu2 %1279 }
 0x2f1   : > { %v1657_v33 = vperm.slane %v1280_v51, %v2999_v48 }
 0x2f2   : > { %v1654_v38 = vsel %vm706_vm7, %v1653_v15, %v1652_v46 }
 0x2f3   : > { %v1656_v61 = vsel %vm4082_vm15, %v1655_v2, %v1654_v38 }
 0x2f4   : > { %v1658_v3 = vsel %vm4083_vm9, %v1657_v33, %v1656_v61 }
 0x2f7   : > { %v1284_v55 = vpop.xlane.xlu1 %1283  ;;  %v1282_v10 = vpop.xlane.xlu0 %1281 }
 0x2f8   : > { %v1661_v49 = vperm.slane %v1284_v55, %v3054_v26  ;;  %v1659_v35 = vperm.slane %v1282_v10, %v3027_v37  ;;  %v1286_v24 = vpop.xlane.xlu2 %1285 }
 0x2f9   : > { %v1663_v23 = vperm.slane %v1286_v24, %v3068_v56 }
 0x2fa   : > { %v1660_v5 = vsel %vm4084_vm8, %v1659_v35, %v1658_v3 }
 0x2fb   : > { %v1662_v27 = vsel %vm722_vm11, %v1661_v49, %v1660_v5 }
 0x2fc   : > { %v1664_v54 = vsel %vm726_vm12, %v1663_v23, %v1662_v27 }
 0x2ff   : > { %v1290_v32 = vpop.xlane.xlu1 %1289  ;;  %v1288_v44 = vpop.xlane.xlu0 %1287 }
 0x300   : > { %v1667_v63 = vperm.slane %v1290_v32, %v3128_v18  ;;  %v1665_v58 = vperm.slane %v1288_v44, %v3092_v30  ;;  %v1292_v0 = vpop.xlane.xlu2 %1291 }
 0x301   : > { %v1669_v47 = vperm.slane %v1292_v0, %v2822_v1 }
 0x302   : > { %v1666_v57 = vsel %vm730_vm13, %v1665_v58, %v1664_v54 }
 0x303   : > { %v1668_v50 = vsel %vm734_vm14, %v1667_v63, %v1666_v57 }
 0x304   : > { %v3711_v60 = vsel %vm4085_vm5, %v1668_v50, %v1734_v52 }
 0x307   : > { %v1296_v28 = vpop.xlane.xlu1 %1295  ;;  %v1294_v11 = vpop.xlane.xlu0 %1293 }
 0x308   : > { %v1670_v7 = vperm.slane %v1294_v11, %v2833_v40  ;;  %v1298_v41 = vpop.xlane.xlu2 %1297  ;;  %v1672_v46 = vperm.slane %v1296_v28, %v2838_v6 }
 0x309   : > { %v1674_v53 = vperm.slane %v1298_v41, %v2847_v14 }
 0x30a   : > { %v1671_v36 = vsel %vm678_vm0, %v1670_v7, %v1669_v47 }
 0x30b   : > { %v1673_v21 = vsel %vm682_vm1, %v1672_v46, %v1671_v36 }
 0x30c   : > { %v1675_v3 = vsel %vm686_vm2, %v1674_v53, %v1673_v21 }
 0x30f   : > { %v1302_v17 = vpop.xlane.xlu1 %1301  ;;  %v1300_v34 = vpop.xlane.xlu0 %1299 }
 0x310   : > { %v1304_v9 = vpop.xlane.xlu2 %1303  ;;  %v1676_v2 = vperm.slane %v1300_v34, %v2867_v13  ;;  %v1678_v55 = vperm.slane %v1302_v17, %v2890_v62 }
 0x311   : > { %v1680_v24 = vperm.slane %v1304_v9, %v2893_v19 }
 0x312   : > { %v1677_v10 = vsel %vm690_vm3, %v1676_v2, %v1675_v3 }
 0x313   : > { %v1679_v23 = vsel %vm694_vm4, %v1678_v55, %v1677_v10 }
 0x314   : > { %v1681_v63 = vsel %vm4081_vm10, %v1680_v24, %v1679_v23 }
 0x317   : > { %v1308_v31 = vpop.xlane.xlu1 %1307  ;;  %v1306_v20 = vpop.xlane.xlu0 %1305 }
 0x318   : > { %v1310_v4 = vpop.xlane.xlu2 %1309  ;;  %v1682_v5 = vperm.slane %v1306_v20, %v2937_v25 }
 0x31a   : > { %v1683_v58 = vsel %vm702_vm6, %v1682_v5, %v1681_v63 }
 0x31f   : > { %v1314_v43 = vpop.xlane.xlu1 %1313  ;;  %v1312_v12 = vpop.xlane.xlu0 %1311 }
 0x320   : > { %v1324_v8 = vpop.xlane.xlu2 %1323 }
 0x321   : > { %v1700_v33 = vperm.slane %v1324_v8, %v2822_v1 }
 0x327   : > { %v1328_v52 = vpop.xlane.xlu1 %1327  ;;  %v1326_v45 = vpop.xlane.xlu0 %1325 }
 0x328   : > { %v1330_v39 = vpop.xlane.xlu2 %1329  ;;  %v1701_v38 = vperm.slane %v1326_v45, %v2833_v40  ;;  %v1703_v49 = vperm.slane %v1328_v52, %v2838_v6  ;;  %v1684_v6 = vperm.slane %v1308_v31, %v2959_v59 }
 0x329   : > { %v1705_v1 = vperm.slane %v1330_v39, %v2847_v14  ;;  %v1686_v14 = vperm.slane %v1310_v4, %v2962_v42 }
 0x32a   : > { %v1702_v35 = vsel %vm678_vm0, %v1701_v38, %v1700_v33  ;;  %v1685_v47 = vsel %vm706_vm7, %v1684_v6, %v1683_v58  ;;  %vm4086_vm0 = vmmov %vm4082_vm15 }
 0x32b   : > { %v1704_v40 = vsel %vm682_vm1, %v1703_v49, %v1702_v35  ;;  %v1687_v17 = vsel %vm4086_vm0, %v1686_v14, %v1685_v47  ;;  %vm4087_vm1 = vmmov %vm4083_vm9  ;;  %v970_v49 = vld [vmem:[#allocation3] sm:$0xff]  ;;  %vm4094_vm9 = vcmask 1047559  }
 0x32c   : > { %v1706_v0 = vsel %vm686_vm2, %v1705_v1, %v1704_v40  ;;  %vm4088_vm2 = vmmov %vm4081_vm10 }
 0x32f   : > { %v1334_v29 = vpop.xlane.xlu1 %1333  ;;  %v1332_v22 = vpop.xlane.xlu0 %1331 }
 0x330   : > { %v1336_v16 = vpop.xlane.xlu2 %1335  ;;  %v1707_v27 = vperm.slane %v1332_v22, %v2867_v13  ;;  %v1709_v57 = vperm.slane %v1334_v29, %v2890_v62  ;;  %v1688_v13 = vperm.slane %v1312_v12, %v2999_v48  ;;  %v1690_v62 = vperm.slane %v1314_v43, %v3027_v37 }
 0x331   : > { %v1711_v28 = vperm.slane %v1336_v16, %v2893_v19 }
 0x332   : > { %v1708_v50 = vsel %vm690_vm3, %v1707_v27, %v1706_v0  ;;  %v1689_v9 = vsel %vm4087_vm1, %v1688_v13, %v1687_v17  ;;  %vm4089_vm3 = vmmov %vm4084_vm8 }
 0x333   : > { %v1710_v11 = vsel %vm694_vm4, %v1709_v57, %v1708_v50  ;;  %v1691_v8 = vsel %vm4089_vm3, %v1690_v62, %v1689_v9  ;;  %vm4090_vm4 = vmmov %vm4086_vm0 }
 0x334   : > { %v1712_v31 = vsel %vm4088_vm2, %v1711_v28, %v1710_v11  ;;  %vm4093_vm15 = vmmov %vm4089_vm3 }
 0x337   : > { %v1340_v15 = vpop.xlane.xlu1 %1339  ;;  %v1338_v51 = vpop.xlane.xlu0 %1337 }
 0x338   : > { %v1342_v61 = vpop.xlane.xlu2 %1341  ;;  %v1713_v7 = vperm.slane %v1338_v51, %v2937_v25  ;;  %v1715_v20 = vperm.slane %v1340_v15, %v2959_v59 }
 0x339   : > { %v1717_v25 = vperm.slane %v1342_v61, %v2962_v42 }
 0x33a   : > { %v1714_v19 = vsel %vm702_vm6, %v1713_v7, %v1712_v31  ;;  %vm4091_vm6 = vmmov %vm4087_vm1 }
 0x33b   : > { %v1716_v52 = vsel %vm706_vm7, %v1715_v20, %v1714_v19  ;;  %vm4092_vm7 = vcmask 1046534  }
 0x33c   : > { %v1718_v16 = vsel %vm4090_vm4, %v1717_v25, %v1716_v52 }
 0x33f   : > { %v1316_v54 = vpop.xlane.xlu1 %1315  ;;  %v1344_v32 = vpop.xlane.xlu0 %1343 }
 0x340   : > { %v1346_v44 = vpop.xlane.xlu2 %1345  ;;  %v1692_v4 = vperm.slane %v1316_v54, %v3054_v26  ;;  %v1719_v45 = vperm.slane %v1344_v32, %v2999_v48 }
 0x341   : > { %v1721_v46 = vperm.slane %v1346_v44, %v3027_v37 }
 0x342   : > { %v1693_v43 = vsel %vm722_vm11, %v1692_v4, %v1691_v8  ;;  %v1720_v53 = vsel %vm4091_vm6, %v1719_v45, %v1718_v16 }
 0x343   : > { %v1722_v38 = vsel %vm4093_vm15, %v1721_v46, %v1720_v53 }
 0x347   : > { %v1348_v41 = vpop.xlane.xlu1 %1347  ;;  %v1318_v36 = vpop.xlane.xlu0 %1317 }
 0x348   : > { %v1320_v34 = vpop.xlane.xlu2 %1319  ;;  %v1694_v12 = vperm.slane %v1318_v36, %v3068_v56  ;;  %v1723_v21 = vperm.slane %v1348_v41, %v3054_v26 }
 0x349   : > { %v1696_v39 = vperm.slane %v1320_v34, %v3092_v30 }
 0x34a   : > { %v1695_v59 = vsel %vm726_vm12, %v1694_v12, %v1693_v43  ;;  %v1724_v37 = vsel %vm722_vm11, %v1723_v21, %v1722_v38 }
 0x34b   : > { %v1697_v2 = vsel %vm730_vm13, %v1696_v39, %v1695_v59 }
 0x34f   : > { %v1322_v29 = vpop.xlane.xlu1 %1321  ;;  %v1350_v22 = vpop.xlane.xlu0 %1349 }
 0x350   : > { %v1698_v42 = vperm.slane %v1322_v29, %v3128_v18  ;;  %v1725_v15 = vperm.slane %v1350_v22, %v3068_v56  ;;  %v1352_v51 = vpop.xlane.xlu2 %1351 }
 0x351   : > { %v1727_v61 = vperm.slane %v1352_v51, %v3092_v30 }
 0x352   : > { %v1699_v48 = vsel %vm734_vm14, %v1698_v42, %v1697_v2  ;;  %v1726_v3 = vsel %vm726_vm12, %v1725_v15, %v1724_v37 }
 0x353   : > { %v1736_v33 = vsel %vm4092_vm7, %v1699_v48, %v3711_v60  ;;  %v1728_v10 = vsel %vm730_vm13, %v1727_v61, %v1726_v3 }
 0x357   : > { %v1354_v55 = vpop.xlane.xlu0 %1353 }
 0x358   : > { %v1729_v26 = vperm.slane %v1354_v55, %v3128_v18 }
 0x35a   : > { %v1730_v56 = vsel %vm734_vm14, %v1729_v26, %v1728_v10  ;;  %1744 = sbr.rel (%p1866_p7) target bundleno = 877 (0x36d), region = 36 }
 0x35b   : > { %v1737_v35 = vsel %vm4094_vm9, %v1730_v56, %v1736_v33 }
 0x35c   : > { %v1739_v24 = vadd.f32 %v1737_v35, %v970_v49 }
 0x35e   : > { %1740 = vst [vmem:[#allocation3] sm:$0xff] %v1739_v24 }
 0x35f   : > { %v1745_v60 = vld [vmem:[#allocation2] sm:$0xff] }
 0x360   : > { %v1746_v30 = vmul.f32 0.00390625, %v1745_v60 }
 0x362   : > { %1752 = vst [vmem:[%s2352_s19] sm:$0xff] %v1746_v30  ;;  %v1748_v5 = vmul.f32 %v1746_v30, %v1745_v60 }
 0x365   : > { %v1747_v23 = vld [vmem:[#allocation3] sm:$0xff] }
 0x366   : > { %v1749_v18 = vsub.f32 %v1747_v23, %v1748_v5 }
 0x368   : > { %v1750_v1 = vmul.f32 0.003921569, %v1749_v18 }
 0x36a   : > { %v1751_v40 = vmax.f32 %v1750_v1, 0.0 }
 0x36c   : > { %1753 = vst [vmem:[%s2352_s19 + $0x8] sm:$0xff] %v1751_v40 }
 0x36d PF: > { %s1873_s20 = sshll.u32 %s2205_s13, 4  ;;  %s1768_s3 = sshll.u32 %s2352_s19, 4  ;;  %s1769_s3 = int_to_ptr.vmem [resolvable:$true] %s1768_s3 }
 0x36e   : > { %s1766_s30 = scalar_lea.hbm %s3836_s1, %s1873_s20  ;;  %s1755_s26 = scalar_lea.sflag [#allocation6], %s150_s23 }
 0x36f   : > { %s1770_s22 = sshll.u32 %s1766_s30, 4  ;;  %s2115_s13 = scalar_lea.hbm %s3836_s1, 32  ;;  %s1771_s22 = int_to_ptr.hbm [resolvable:$true] %s1770_s22 }
 0x370   : > { %s2109_s24 = sshra.s32 %s1771_s22, 4  ;;  %s2110_s24 = int_to_ptr.hbm [resolvable:$true] %s2109_s24 }
 0x371   : > { %s2111_s21 = scalar_lea.hbm %s2110_s24, 16  ;;  %p2116_p13 = scmp.lt.s32.totalorder %s2110_s24, %s3836_s1 }
 0x372   : > { %p2112_p9 = scmp.ne.s32.totalorder %s2110_s24, %s2111_s21  ;;  %p2117_p0 = scmp.lt.s32.totalorder %s2115_s13, %s2111_s21 }
 0x374   : > { %p2113_p10 = pnand %p2112_p9, %p2315_p12  ;;  %p2118_p1 = por %p2117_p0, %p2116_p13 }
 0x376   : > { %p2114_p11 = pneg %p2113_p10 }
 0x378   : > { %p2119_p4 = pnand %p2118_p1, %p2114_p11 }
 0x37a   : > { %2122 = shalt.err (!%p2119_p4)
}
 0x37b   : > { %1876 = dma.vmem_to_hbm [thread:$0]  (%p2315_p12), %s1769_s3, 256, %s1771_s22, %s1755_s26  }
 0x37c PF: > { %p1887_p5 = scmp.ge.s32.totalorder %s2217_s16, 2  ;;  %s1782_s9 = sand.u32 1, %s2177_s6  }
 0x37d   : > { %s1783_s17 = scalar_lea.sflag [#allocation6], %s1782_s9 }
 0x37e   : > { %p1883_p6 = pnand %p1887_p5, %p2328_p2 }
 0x380   : > { %p1884_p8 = pneg %p1883_p6 }
 0x382   : > { %2172 = dma.done.wait (%p1884_p8), %s1783_s17, 256  }
 0x383   : > { %2174 = vsyncadd (%p1884_p8), %s1783_s17, 4294967040  ;;  %s17_s16 = sadd.s32 1, %s2217_s16   ;;  %s4095_s28 = sld [smem:[#allocation10_spill]] }
 0x384   : > { %p14_p3 = scmp.ge.s32.totalorder %s17_s16, 6   ;;  %s4096_s11 = sld [smem:[#allocation13_spill]] }
 0x385   : > { %s4097_s23 = sld [smem:[#allocation11_spill]]  ;;  %s4099_s6 = smov %s2181_s7 }
 0x386   : > { %s4098_s19 = sld [smem:[#allocation12_spill]]  ;;  %s4100_s7 = smov %s2185_s8 }
 0x387   : > { %s4101_s8 = smov %s2320_s29  ;;  %s4102_s9 = smov %s2193_s10 }
 0x388   : > { %s4104_s12 = smov %s2209_s14  ;;  %s4105_s13 = smov %s2213_s15 }
 0x389   : > { %s4103_s10 = smov %s4095_s28  ;;  %16 = sbr.rel (!%p14_p3) target bundleno = 9 (0x9), region = 77 }
 0x38b   : > { %s4106_s14 = smov %s4097_s23 }
 0x38c   : > { %s4107_s15 = smov %s4098_s19 }
 0x38e   :  { %1789 = vsyncpa [#allocation5], 1 }
 0x38f   :  { %1791 = vsyncpa [#allocation5 + $0x1], 1 }
 0x390   :  { %1792 = vsyncpa [#allocation6], 1 }
 0x391   :  { %1794 = vsyncpa [#allocation6 + $0x1], 1 }

</bundles_post_ra>
